<compile_context>
chip_gen: v7x
topology: tpu7x:2x2x1
jax: 0.10.0
libtpu: 0.0.40
codegen_flags: <defaults>
</compile_context>

<pallas_src>
import functools

import jax
import jax.numpy as jnp
import numpy as np
from jax.experimental import pallas as pl
from jax.experimental.pallas import tpu as pltpu

EPS = 1e-5  # eps used by nn.BatchNorm2d and by the explicit log(var + 1e-5)


def _conv3x3_nhwc(x, w):
    """3x3 'same' conv, NHWC input, w: (9, Cin, Cout).  Host-side / reference."""
    B, H, W, _ = x.shape
    xp = jnp.pad(x, ((0, 0), (1, 1), (1, 1), (0, 0)))
    out = jnp.zeros((B, H, W, w.shape[-1]), jnp.float32)
    for dy in range(3):
        for dx in range(3):
            out = out + jnp.einsum('bhwc,co->bhwo',
                                   xp[:, dy:dy + H, dx:dx + W, :],
                                   w[dy * 3 + dx],
                                   precision=jax.lax.Precision.HIGHEST)
    return out


def _make_shift_masks(H, W):
    """(9, H*W) 0/1 masks: tap k=(3*dy+dx) is valid at pixel (h,w) iff the
    shifted source pixel (h+dy-1, w+dx-1) lies inside the image."""
    hh = jnp.arange(H).reshape(H, 1)
    ww = jnp.arange(W).reshape(1, W)
    rows = []
    for dy in range(3):
        for dx in range(3):
            oy, ox = dy - 1, dx - 1
            ok = ((hh + oy >= 0) & (hh + oy < H) &
                  (ww + ox >= 0) & (ww + ox < W))
            rows.append(ok.reshape(-1))
    return jnp.stack(rows, axis=0).astype(jnp.float32)


def _num_grid_steps(batch):
    """2 parallel grid steps on multi-TensorCore chips (both cores get a full
    lane-folded matmul); otherwise 1 step (the grid is a serial loop on a
    single TC, so fewer steps = less per-step overhead and a wider N)."""
    try:
        kind = jax.devices()[0].device_kind.lower()
    except Exception:
        kind = ""
    multi_tc = any(tag in kind for tag in ("v7", "v5p", "v4"))
    if multi_tc and batch >= 2 and batch % 2 == 0:
        return 2
    return 1


def _coupling_kernel(W, C, pad_k1,
                     x_ref, shmask_ref, mlane_ref, omlane_ref,
                     ain_ref, bin_ref, w1_ref, b1_ref, w2_ref, b2_ref,
                     lrs_ref, lrb_ref, invo_ref, ybv_ref, hlv_ref,
                     out_ref):
    C2 = 2 * C
    N = x_ref.shape[-1]                                   # B_tile * H * W lanes
    offs = [(dy - 1) * W + (dx - 1) for dy in range(3) for dx in range(3)]

    def im2col(a):
        """a: (rows, N) f32 channel-major activation -> (9*rows, N) bf16.

        Each tap is an XLU lane roll; the boundary masks zero every element
        whose source pixel lies outside its own image (this also kills any
        wrap-around / cross-image bleed of the circular roll)."""
        blocks = []
        for k, off in enumerate(offs):
            if off == 0:
                blocks.append(a.astype(jnp.bfloat16))
            else:
                rolled = pltpu.roll(a, (-off) % N, 1)      # blk[j] = a[j + off]
                blocks.append((rolled * shmask_ref[k:k + 1, :]).astype(jnp.bfloat16))
        return jnp.concatenate(blocks, axis=0)

    x = x_ref[...]                                         # (C, N) f32
    mlane = mlane_ref[...]                                 # (1, N)
    omlane = omlane_ref[...]                               # (1, N)

    # in_bn(x*mask) folded into one mul-add; one relu of +/-t gives
    # cat([relu(x1), relu(-x1)]) (the constant mask channel lives in b1).
    t = x * (ain_ref[...] * mlane) + bin_ref[...]
    feat = jnp.concatenate([jnp.maximum(t, 0.0), jnp.maximum(-t, 0.0)], axis=0)

    # conv1 (3x3 same, no bias) with mid-BN + mask-channel folded in:
    # one matmul, K padded from 9*2C to a multiple of 16.
    a1 = im2col(feat)                                      # (9*2C, N) bf16
    if pad_k1:
        a1 = jnp.concatenate(
            [a1, jnp.zeros((pad_k1, N), jnp.bfloat16)], axis=0)
    h = jnp.dot(w1_ref[...], a1, preferred_element_type=jnp.float32) + b1_ref[...]
    h = jnp.maximum(h, 0.0)                                # (MID, N) f32

    # conv2 (3x3 same, bias): one matmul, K = 9*MID.
    a2 = im2col(h)                                         # (9*MID, N) bf16
    out = jnp.dot(w2_ref[...], a2, preferred_element_type=jnp.float32) + b2_ref[...]

    # Affine coupling tail (reverse=False, eval-mode out_bn), lane-dense.
    shift = out[0:C, :]
    logr = lrs_ref[...] * jnp.tanh(out[C:C2, :]) + lrb_ref[...]   # already *(1-mask)
    y = x * jnp.exp(logr) + shift * omlane
    ys = invo_ref[...] * omlane + mlane                    # rank-1, hidden under MXU
    yb = ybv_ref[...] * omlane
    y_out = y * ys + yb                                    # out_bn (eval) blend
    ld = logr - hlv_ref[...] * omlane

    # Single 8-sublane-aligned output block: rows 0:C = y, rows C:2C = log_diag_J.
    out_ref[...] = jnp.concatenate([y_out, ld], axis=0)
    # TODO(synk): reverse=True branch and training-mode batch statistics are
    # not implemented (eval-mode forward with reverse=False only).


def checkerboard_coupling_forward(x_nchw, p):
    """NCHW in / NCHW out.  Kernel computes in channel-major (C, B_tile*H*W)."""
    x_nchw = x_nchw.astype(jnp.float32)
    B, C, H, W = x_nchw.shape
    C2, HW = 2 * C, H * W
    MID = p['w1'].shape[-1]

    n_steps = _num_grid_steps(B)
    b_tile = B // n_steps
    N = b_tile * HW

    # ------------- host-side constant folding (eval-mode running stats) -------------
    mask_hw = p['mask'].reshape(1, HW)                     # checkerboard (1, HW)
    mlane = jnp.tile(mask_hw, (1, b_tile))                 # (1, N)
    omlane = 1.0 - mlane

    # in_bn folded:  x1 = x*mask*a_in + b_in
    a_in = (p['in_gamma'] * jax.lax.rsqrt(p['in_rv'] + EPS)).reshape(C, 1)
    b_in = (p['in_beta'] - p['in_rm'] * p['in_gamma']
            * jax.lax.rsqrt(p['in_rv'] + EPS)).reshape(C, 1)

    # conv1 + mid-BN folded; K padded to a multiple of 16 with zero columns.
    K1 = 9 * C2
    K1P = ((K1 + 15) // 16) * 16
    pad_k1 = K1P - K1
    m_a = (p['m_gamma'] * jax.lax.rsqrt(p['m_rv'] + EPS)).reshape(MID, 1)
    m_b = p['m_beta'].reshape(MID, 1) - p['m_rm'].reshape(MID, 1) * m_a
    w1_flat = (jnp.transpose(p['w1'][:, :C2, :], (2, 0, 1)).reshape(MID, K1) * m_a)
    w1t = jnp.pad(w1_flat, ((0, 0), (0, pad_k1))).astype(jnp.bfloat16)   # (MID, K1P)
    # constant checkerboard channel of conv1 folded into a per-pixel bias.
    mask_conv = _conv3x3_nhwc(p['mask'], p['w1'][:, C2:, :])             # (1,H,W,MID)
    b1_hw = jnp.transpose(mask_conv.reshape(HW, MID)) * m_a + m_b        # (MID, HW)
    b1t = jnp.tile(b1_hw, (1, b_tile))                                   # (MID, N)

    w2t = jnp.transpose(p['w2'], (2, 0, 1)).reshape(C2, 9 * MID).astype(jnp.bfloat16)
    b2t = p['b2'].reshape(C2, 1)

    # affine-coupling tail constants (mask, out_bn running stats, log-det term).
    lrs = p['scale'].reshape(()) * omlane                  # (1, N)
    lrb = p['scale_shift'].reshape(()) * omlane            # (1, N)
    inv_o = jax.lax.rsqrt(p['out_rv'] + EPS).reshape(C, 1)
    ybv = -(p['out_rm'].reshape(C, 1) * inv_o)
    hlv = 0.5 * jnp.log(p['out_rv'] + EPS).reshape(C, 1)

    shmask = jnp.tile(_make_shift_masks(H, W), (1, b_tile))              # (9, N)

    # Batch folded into the lane axis: (n_steps, C, b_tile*HW), image-major lanes.
    x_fold = (x_nchw.reshape(n_steps, b_tile, C, HW)
              .transpose(0, 2, 1, 3).reshape(n_steps, C, N))

    def const(shape):
        nd = len(shape)
        return pl.BlockSpec(shape, lambda g, nd=nd: (0,) * nd)

    grid_spec = pltpu.PrefetchScalarGridSpec(
        num_scalar_prefetch=0,
        grid=(n_steps,),
        in_specs=[
            pl.BlockSpec((None, C, N), lambda g: (g, 0, 0)),   # x (per batch tile)
            const((9, N)),                                     # im2col boundary masks
            const((1, N)), const((1, N)),                      # mask, 1-mask lanes
            const((C, 1)), const((C, 1)),                      # folded in_bn
            const((MID, K1P)), const((MID, N)),                # conv1 (bf16) + bias
            const((C2, 9 * MID)), const((C2, 1)),              # conv2 (bf16) + bias
            const((1, N)), const((1, N)),                      # lr scale/shift lanes
            const((C, 1)), const((C, 1)), const((C, 1)),       # out_bn folds
        ],
        out_specs=pl.BlockSpec((None, C2, N), lambda g: (g, 0, 0)),
    )

    out = pl.pallas_call(
        functools.partial(_coupling_kernel, W, C, pad_k1),
        out_shape=jax.ShapeDtypeStruct((n_steps, C2, N), jnp.float32),
        grid_spec=grid_spec,
        compiler_params=pltpu.CompilerParams(
            dimension_semantics=("parallel",)),
    )(x_fold, shmask, mlane, omlane, a_in, b_in, w1t, b1t, w2t, b2t,
      lrs, lrb, inv_o, ybv, hlv)

    out = (out.reshape(n_steps, C2, b_tile, HW)
           .transpose(0, 2, 1, 3).reshape(B, C2, H, W))
    return out[:, :C], out[:, C:]


def init_params(key, C, MID, size):
    """Deterministic synthetic parameters matching the module's __init__ shapes."""
    CIN1 = 2 * C + 1
    ks = jax.random.split(key, 16)

    # checkerboard mask, config=1 (AbstractCoupling.build_mask), stored NHWC
    m = (jnp.arange(size)[:, None] + jnp.arange(size) + 1) % 2
    mask = m.astype(jnp.float32).reshape(1, size, size, 1)

    def cvec(a):
        return jnp.asarray(a, jnp.float32).reshape(1, 1, 1, -1)

    # in_bn = BatchNorm2d(C), affine=True (eval: running stats)
    in_gamma = cvec(1.0 + 0.1 * jax.random.normal(ks[0], (C,)))
    in_beta = cvec(0.1 * jax.random.normal(ks[1], (C,)))
    in_rm = cvec(0.1 * jax.random.normal(ks[2], (C,)))
    in_rv = cvec(0.5 + jax.random.uniform(ks[3], (C,)))

    # conv1: WeightNormConv2d(CIN1 -> MID, 3x3, bias=False, scale=False) => g=1
    v1 = 0.3 * jax.random.normal(ks[4], (9, CIN1, MID))
    w1 = (v1 / jnp.sqrt(jnp.sum(v1 ** 2, axis=(0, 1), keepdims=True))).astype(jnp.float32)

    # middle BatchNorm2d(MID)
    m_gamma = (1.0 + 0.1 * jax.random.normal(ks[5], (MID,))).reshape(1, MID)
    m_beta = (0.1 * jax.random.normal(ks[6], (MID,))).reshape(1, MID)
    m_rm = (0.1 * jax.random.normal(ks[7], (MID,))).reshape(1, MID)
    m_rv = (0.5 + jax.random.uniform(ks[8], (MID,))).reshape(1, MID)

    # conv2: WeightNormConv2d(MID -> 2C, 3x3, bias=True, scale=True)
    v2 = 0.3 * jax.random.normal(ks[9], (9, MID, 2 * C))
    g2 = 0.5 + jax.random.uniform(ks[10], (2 * C,))
    w2 = (g2 * v2 / jnp.sqrt(jnp.sum(v2 ** 2, axis=(0, 1), keepdims=True))).astype(jnp.float32)
    b2 = (0.05 * jax.random.normal(ks[11], (2 * C,))).reshape(1, 2 * C)

    # affine coupling scalars (nn.Parameter(torch.zeros(1)); nonzero here)
    scale = jnp.full((1, 1, 1, 1), 0.3, jnp.float32)
    scale_shift = jnp.full((1, 1, 1, 1), 0.05, jnp.float32)

    # out_bn = BatchNorm2d(C, affine=False) running stats
    out_rm = cvec(0.1 * jax.random.normal(ks[12], (C,)))
    out_rv = cvec(0.5 + jax.random.uniform(ks[13], (C,)))

    return dict(mask=mask,
                in_gamma=in_gamma, in_beta=in_beta, in_rm=in_rm, in_rv=in_rv,
                w1=w1,
                m_gamma=m_gamma.astype(jnp.float32), m_beta=m_beta.astype(jnp.float32),
                m_rm=m_rm.astype(jnp.float32), m_rv=m_rv.astype(jnp.float32),
                w2=w2, b2=b2.astype(jnp.float32),
                scale=scale, scale_shift=scale_shift,
                out_rm=out_rm, out_rv=out_rv)


def reference_forward(x_nchw, p):
    """Pure-JAX reference of the same forward pass (for correctness check)."""
    x = jnp.transpose(x_nchw, (0, 2, 3, 1)).astype(jnp.float32)
    B, H, W, C = x.shape
    mask, one_m = p['mask'], 1.0 - p['mask']

    x1 = (x * mask - p['in_rm']) / jnp.sqrt(p['in_rv'] + EPS) * p['in_gamma'] + p['in_beta']
    xcat = jnp.concatenate([x1, -x1, jnp.broadcast_to(mask, (B, H, W, 1))], axis=-1)
    xcat = jax.nn.relu(xcat)

    h = _conv3x3_nhwc(xcat, p['w1'])
    h = (h - p['m_rm'].reshape(1, 1, 1, -1)) / jnp.sqrt(p['m_rv'].reshape(1, 1, 1, -1) + EPS) \
        * p['m_gamma'].reshape(1, 1, 1, -1) + p['m_beta'].reshape(1, 1, 1, -1)
    h = jax.nn.relu(h)
    out = _conv3x3_nhwc(h, p['w2']) + p['b2'].reshape(1, 1, 1, -1)

    shift, logr = out[..., :C], out[..., C:]
    logr = p['scale'] * jnp.tanh(logr) + p['scale_shift']
    shift, logr = shift * one_m, logr * one_m
    y = x * jnp.exp(logr) + shift
    y_bn = (y - p['out_rm']) / jnp.sqrt(p['out_rv'] + EPS)
    y = y_bn * one_m + y * mask
    ld = logr - 0.5 * jnp.log(p['out_rv'] + EPS) * one_m
    return jnp.transpose(y, (0, 3, 1, 2)), jnp.transpose(ld, (0, 3, 1, 2))


if __name__ == "__main__":
    B, C, S = 2, 4, 16          # batch, in_out_dim, spatial size
    MID = 32                    # mid_dim

    key = jax.random.PRNGKey(0)
    kx, kp = jax.random.split(key)
    x = jax.random.normal(kx, (B, C, S, S), jnp.float32)   # NCHW like PyTorch
    params = init_params(kp, C, MID, S)

    y, log_diag_J = checkerboard_coupling_forward(x, params)
    y = jax.block_until_ready(y)
    log_diag_J = jax.block_until_ready(log_diag_J)

    y_ref, ld_ref = reference_forward(x, params)
    np.testing.assert_allclose(np.asarray(y), np.asarray(y_ref), rtol=2e-2, atol=2e-2)
    np.testing.assert_allclose(np.asarray(log_diag_J), np.asarray(ld_ref),
                               rtol=2e-2, atol=2e-2)

    assert y.shape == (B, C, S, S) and log_diag_J.shape == (B, C, S, S)
    print("KERNEL_OK")
</pallas_src>

<mosaic_0001>
module attributes {stable_mosaic.version = 11 : i64} {
  func.func @_coupling_kernel(%arg0: i32, %arg1: memref<1x4x512xf32, #tpu.memory_space<vmem>>, %arg2: memref<9x512xf32, #tpu.memory_space<vmem>>, %arg3: memref<1x512xf32, #tpu.memory_space<vmem>>, %arg4: memref<1x512xf32, #tpu.memory_space<vmem>>, %arg5: memref<4x1xf32, #tpu.memory_space<vmem>>, %arg6: memref<4x1xf32, #tpu.memory_space<vmem>>, %arg7: memref<32x80xbf16, #tpu.memory_space<vmem>>, %arg8: memref<32x512xf32, #tpu.memory_space<vmem>>, %arg9: memref<8x288xbf16, #tpu.memory_space<vmem>>, %arg10: memref<8x1xf32, #tpu.memory_space<vmem>>, %arg11: memref<1x512xf32, #tpu.memory_space<vmem>>, %arg12: memref<1x512xf32, #tpu.memory_space<vmem>>, %arg13: memref<4x1xf32, #tpu.memory_space<vmem>>, %arg14: memref<4x1xf32, #tpu.memory_space<vmem>>, %arg15: memref<4x1xf32, #tpu.memory_space<vmem>>, %arg16: memref<1x8x512xf32, #tpu.memory_space<vmem>>) attributes {dimension_semantics = [#tpu.dimension_semantics<parallel>], iteration_bounds = array<i64: 1>, scalar_prefetch = 0 : i64, scratch_operands = 0 : i64, tpu.core_type = #tpu.core_type<tc>, window_params = [{transform_indices = @transform_0, window_bounds = array<i64: 1, 4, 512>}, {pipeline_mode = #tpu.pipeline_mode<synchronous>, transform_indices = @transform_1, window_bounds = array<i64: 9, 512>}, {pipeline_mode = #tpu.pipeline_mode<synchronous>, transform_indices = @transform_2, window_bounds = array<i64: 1, 512>}, {pipeline_mode = #tpu.pipeline_mode<synchronous>, transform_indices = @transform_3, window_bounds = array<i64: 1, 512>}, {pipeline_mode = #tpu.pipeline_mode<synchronous>, transform_indices = @transform_4, window_bounds = array<i64: 4, 1>}, {pipeline_mode = #tpu.pipeline_mode<synchronous>, transform_indices = @transform_5, window_bounds = array<i64: 4, 1>}, {pipeline_mode = #tpu.pipeline_mode<synchronous>, transform_indices = @transform_6, window_bounds = array<i64: 32, 80>}, {pipeline_mode = #tpu.pipeline_mode<synchronous>, transform_indices = @transform_7, window_bounds = array<i64: 32, 512>}, {pipeline_mode = #tpu.pipeline_mode<synchronous>, transform_indices = @transform_8, window_bounds = array<i64: 8, 288>}, {pipeline_mode = #tpu.pipeline_mode<synchronous>, transform_indices = @transform_9, window_bounds = array<i64: 8, 1>}, {pipeline_mode = #tpu.pipeline_mode<synchronous>, transform_indices = @transform_10, window_bounds = array<i64: 1, 512>}, {pipeline_mode = #tpu.pipeline_mode<synchronous>, transform_indices = @transform_11, window_bounds = array<i64: 1, 512>}, {pipeline_mode = #tpu.pipeline_mode<synchronous>, transform_indices = @transform_12, window_bounds = array<i64: 4, 1>}, {pipeline_mode = #tpu.pipeline_mode<synchronous>, transform_indices = @transform_13, window_bounds = array<i64: 4, 1>}, {pipeline_mode = #tpu.pipeline_mode<synchronous>, transform_indices = @transform_14, window_bounds = array<i64: 4, 1>}, {transform_indices = @transform_15, window_bounds = array<i64: 1, 8, 512>}]} {
    %c0 = arith.constant 0 : index
    %c0_0 = arith.constant 0 : index
    %c0_1 = arith.constant 0 : index
    %0 = vector.load %arg1[%c0, %c0_0, %c0_1] : memref<1x4x512xf32, #tpu.memory_space<vmem>>, vector<1x4x512xf32>
    %1 = vector.shape_cast %0 : vector<1x4x512xf32> to vector<4x512xf32>
    %c0_2 = arith.constant 0 : index
    %c0_3 = arith.constant 0 : index
    %2 = vector.load %arg3[%c0_2, %c0_3] : memref<1x512xf32, #tpu.memory_space<vmem>>, vector<1x512xf32>
    %c0_4 = arith.constant 0 : index
    %c0_5 = arith.constant 0 : index
    %3 = vector.load %arg4[%c0_4, %c0_5] : memref<1x512xf32, #tpu.memory_space<vmem>>, vector<1x512xf32>
    %c0_6 = arith.constant 0 : index
    %c0_7 = arith.constant 0 : index
    %4 = vector.load %arg5[%c0_6, %c0_7] : memref<4x1xf32, #tpu.memory_space<vmem>>, vector<4x1xf32>
    %5 = vector.broadcast %4 : vector<4x1xf32> to vector<4x512xf32>
    %6 = vector.broadcast %2 : vector<1x512xf32> to vector<4x512xf32>
    %7 = arith.mulf %5, %6 : vector<4x512xf32>
    %8 = arith.mulf %1, %7 : vector<4x512xf32>
    %c0_8 = arith.constant 0 : index
    %c0_9 = arith.constant 0 : index
    %9 = vector.load %arg6[%c0_8, %c0_9] : memref<4x1xf32, #tpu.memory_space<vmem>>, vector<4x1xf32>
    %10 = vector.broadcast %9 : vector<4x1xf32> to vector<4x512xf32>
    %11 = arith.addf %8, %10 : vector<4x512xf32>
    %cst = arith.constant 0.000000e+00 : f32
    %12 = vector.broadcast %cst : f32 to vector<4x512xf32>
    %13 = arith.maximumf %11, %12 : vector<4x512xf32>
    %cst_10 = arith.constant 0.000000e+00 : f32
    %14 = vector.broadcast %cst_10 : f32 to vector<4x512xf32>
    %15 = arith.subf %14, %11 : vector<4x512xf32>
    %cst_11 = arith.constant 0.000000e+00 : f32
    %16 = vector.broadcast %cst_11 : f32 to vector<4x512xf32>
    %17 = arith.maximumf %15, %16 : vector<4x512xf32>
    %18 = tpu.concatenate %13, %17 in 0 : vector<4x512xf32>, vector<4x512xf32> -> vector<8x512xf32>
    %c17_i32 = arith.constant 17 : i32
    %19 = tpu.dynamic_rotate %18 by %c17_i32 dim 1 : vector<8x512xf32>, i32 -> vector<8x512xf32>
    %c0_12 = arith.constant 0 : index
    %c0_13 = arith.constant 0 : index
    %20 = vector.load %arg2[%c0_12, %c0_13] : memref<9x512xf32, #tpu.memory_space<vmem>>, vector<1x512xf32>
    %21 = vector.broadcast %20 : vector<1x512xf32> to vector<8x512xf32>
    %22 = arith.mulf %19, %21 : vector<8x512xf32>
    %23 = arith.truncf %22 : vector<8x512xf32> to vector<8x512xbf16>
    %c16_i32 = arith.constant 16 : i32
    %24 = tpu.dynamic_rotate %18 by %c16_i32 dim 1 : vector<8x512xf32>, i32 -> vector<8x512xf32>
    %c1 = arith.constant 1 : index
    %c0_14 = arith.constant 0 : index
    %25 = vector.load %arg2[%c1, %c0_14] : memref<9x512xf32, #tpu.memory_space<vmem>>, vector<1x512xf32>
    %26 = vector.broadcast %25 : vector<1x512xf32> to vector<8x512xf32>
    %27 = arith.mulf %24, %26 : vector<8x512xf32>
    %28 = arith.truncf %27 : vector<8x512xf32> to vector<8x512xbf16>
    %c15_i32 = arith.constant 15 : i32
    %29 = tpu.dynamic_rotate %18 by %c15_i32 dim 1 : vector<8x512xf32>, i32 -> vector<8x512xf32>
    %c2 = arith.constant 2 : index
    %c0_15 = arith.constant 0 : index
    %30 = vector.load %arg2[%c2, %c0_15] : memref<9x512xf32, #tpu.memory_space<vmem>>, vector<1x512xf32>
    %31 = vector.broadcast %30 : vector<1x512xf32> to vector<8x512xf32>
    %32 = arith.mulf %29, %31 : vector<8x512xf32>
    %33 = arith.truncf %32 : vector<8x512xf32> to vector<8x512xbf16>
    %c1_i32 = arith.constant 1 : i32
    %34 = tpu.dynamic_rotate %18 by %c1_i32 dim 1 : vector<8x512xf32>, i32 -> vector<8x512xf32>
    %c3 = arith.constant 3 : index
    %c0_16 = arith.constant 0 : index
    %35 = vector.load %arg2[%c3, %c0_16] : memref<9x512xf32, #tpu.memory_space<vmem>>, vector<1x512xf32>
    %36 = vector.broadcast %35 : vector<1x512xf32> to vector<8x512xf32>
    %37 = arith.mulf %34, %36 : vector<8x512xf32>
    %38 = arith.truncf %37 : vector<8x512xf32> to vector<8x512xbf16>
    %39 = arith.truncf %18 : vector<8x512xf32> to vector<8x512xbf16>
    %c511_i32 = arith.constant 511 : i32
    %40 = tpu.dynamic_rotate %18 by %c511_i32 dim 1 : vector<8x512xf32>, i32 -> vector<8x512xf32>
    %c5 = arith.constant 5 : index
    %c0_17 = arith.constant 0 : index
    %41 = vector.load %arg2[%c5, %c0_17] : memref<9x512xf32, #tpu.memory_space<vmem>>, vector<1x512xf32>
    %42 = vector.broadcast %41 : vector<1x512xf32> to vector<8x512xf32>
    %43 = arith.mulf %40, %42 : vector<8x512xf32>
    %44 = arith.truncf %43 : vector<8x512xf32> to vector<8x512xbf16>
    %c497_i32 = arith.constant 497 : i32
    %45 = tpu.dynamic_rotate %18 by %c497_i32 dim 1 : vector<8x512xf32>, i32 -> vector<8x512xf32>
    %c6 = arith.constant 6 : index
    %c0_18 = arith.constant 0 : index
    %46 = vector.load %arg2[%c6, %c0_18] : memref<9x512xf32, #tpu.memory_space<vmem>>, vector<1x512xf32>
    %47 = vector.broadcast %46 : vector<1x512xf32> to vector<8x512xf32>
    %48 = arith.mulf %45, %47 : vector<8x512xf32>
    %49 = arith.truncf %48 : vector<8x512xf32> to vector<8x512xbf16>
    %c496_i32 = arith.constant 496 : i32
    %50 = tpu.dynamic_rotate %18 by %c496_i32 dim 1 : vector<8x512xf32>, i32 -> vector<8x512xf32>
    %c7 = arith.constant 7 : index
    %c0_19 = arith.constant 0 : index
    %51 = vector.load %arg2[%c7, %c0_19] : memref<9x512xf32, #tpu.memory_space<vmem>>, vector<1x512xf32>
    %52 = vector.broadcast %51 : vector<1x512xf32> to vector<8x512xf32>
    %53 = arith.mulf %50, %52 : vector<8x512xf32>
    %54 = arith.truncf %53 : vector<8x512xf32> to vector<8x512xbf16>
    %c495_i32 = arith.constant 495 : i32
    %55 = tpu.dynamic_rotate %18 by %c495_i32 dim 1 : vector<8x512xf32>, i32 -> vector<8x512xf32>
    %c8 = arith.constant 8 : index
    %c0_20 = arith.constant 0 : index
    %56 = vector.load %arg2[%c8, %c0_20] : memref<9x512xf32, #tpu.memory_space<vmem>>, vector<1x512xf32>
    %57 = vector.broadcast %56 : vector<1x512xf32> to vector<8x512xf32>
    %58 = arith.mulf %55, %57 : vector<8x512xf32>
    %59 = arith.truncf %58 : vector<8x512xf32> to vector<8x512xbf16>
    %60 = tpu.concatenate %23, %28, %33, %38, %39, %44, %49, %54, %59 in 0 : vector<8x512xbf16>, vector<8x512xbf16>, vector<8x512xbf16>, vector<8x512xbf16>, vector<8x512xbf16>, vector<8x512xbf16>, vector<8x512xbf16>, vector<8x512xbf16>, vector<8x512xbf16> -> vector<72x512xbf16>
    %cst_21 = arith.constant 0.000000e+00 : bf16
    %61 = vector.broadcast %cst_21 : bf16 to vector<8x512xbf16>
    %62 = tpu.concatenate %60, %61 in 0 : vector<72x512xbf16>, vector<8x512xbf16> -> vector<80x512xbf16>
    %c0_22 = arith.constant 0 : index
    %c0_23 = arith.constant 0 : index
    %63 = vector.load %arg7[%c0_22, %c0_23] : memref<32x80xbf16, #tpu.memory_space<vmem>>, vector<32x80xbf16>
    %cst_24 = arith.constant dense<0.000000e+00> : vector<32x512xf32>
    %64 = tpu.matmul %63, %62, %cst_24 {dimension_numbers = #tpu.dot_dimension_numbers<[1], [0], [0], [1], [0, 0, 1, 1], [], []>} : vector<32x80xbf16>, vector<80x512xbf16>, vector<32x512xf32> -> vector<32x512xf32>
    %c0_25 = arith.constant 0 : index
    %c0_26 = arith.constant 0 : index
    %65 = vector.load %arg8[%c0_25, %c0_26] : memref<32x512xf32, #tpu.memory_space<vmem>>, vector<32x512xf32>
    %66 = arith.addf %64, %65 : vector<32x512xf32>
    %cst_27 = arith.constant 0.000000e+00 : f32
    %67 = vector.broadcast %cst_27 : f32 to vector<32x512xf32>
    %68 = arith.maximumf %66, %67 : vector<32x512xf32>
    %c17_i32_28 = arith.constant 17 : i32
    %69 = tpu.dynamic_rotate %68 by %c17_i32_28 dim 1 : vector<32x512xf32>, i32 -> vector<32x512xf32>
    %c0_29 = arith.constant 0 : index
    %c0_30 = arith.constant 0 : index
    %70 = vector.load %arg2[%c0_29, %c0_30] : memref<9x512xf32, #tpu.memory_space<vmem>>, vector<1x512xf32>
    %71 = vector.broadcast %70 : vector<1x512xf32> to vector<32x512xf32>
    %72 = arith.mulf %69, %71 : vector<32x512xf32>
    %73 = arith.truncf %72 : vector<32x512xf32> to vector<32x512xbf16>
    %c16_i32_31 = arith.constant 16 : i32
    %74 = tpu.dynamic_rotate %68 by %c16_i32_31 dim 1 : vector<32x512xf32>, i32 -> vector<32x512xf32>
    %c1_32 = arith.constant 1 : index
    %c0_33 = arith.constant 0 : index
    %75 = vector.load %arg2[%c1_32, %c0_33] : memref<9x512xf32, #tpu.memory_space<vmem>>, vector<1x512xf32>
    %76 = vector.broadcast %75 : vector<1x512xf32> to vector<32x512xf32>
    %77 = arith.mulf %74, %76 : vector<32x512xf32>
    %78 = arith.truncf %77 : vector<32x512xf32> to vector<32x512xbf16>
    %c15_i32_34 = arith.constant 15 : i32
    %79 = tpu.dynamic_rotate %68 by %c15_i32_34 dim 1 : vector<32x512xf32>, i32 -> vector<32x512xf32>
    %c2_35 = arith.constant 2 : index
    %c0_36 = arith.constant 0 : index
    %80 = vector.load %arg2[%c2_35, %c0_36] : memref<9x512xf32, #tpu.memory_space<vmem>>, vector<1x512xf32>
    %81 = vector.broadcast %80 : vector<1x512xf32> to vector<32x512xf32>
    %82 = arith.mulf %79, %81 : vector<32x512xf32>
    %83 = arith.truncf %82 : vector<32x512xf32> to vector<32x512xbf16>
    %c1_i32_37 = arith.constant 1 : i32
    %84 = tpu.dynamic_rotate %68 by %c1_i32_37 dim 1 : vector<32x512xf32>, i32 -> vector<32x512xf32>
    %c3_38 = arith.constant 3 : index
    %c0_39 = arith.constant 0 : index
    %85 = vector.load %arg2[%c3_38, %c0_39] : memref<9x512xf32, #tpu.memory_space<vmem>>, vector<1x512xf32>
    %86 = vector.broadcast %85 : vector<1x512xf32> to vector<32x512xf32>
    %87 = arith.mulf %84, %86 : vector<32x512xf32>
    %88 = arith.truncf %87 : vector<32x512xf32> to vector<32x512xbf16>
    %89 = arith.truncf %68 : vector<32x512xf32> to vector<32x512xbf16>
    %c511_i32_40 = arith.constant 511 : i32
    %90 = tpu.dynamic_rotate %68 by %c511_i32_40 dim 1 : vector<32x512xf32>, i32 -> vector<32x512xf32>
    %c5_41 = arith.constant 5 : index
    %c0_42 = arith.constant 0 : index
    %91 = vector.load %arg2[%c5_41, %c0_42] : memref<9x512xf32, #tpu.memory_space<vmem>>, vector<1x512xf32>
    %92 = vector.broadcast %91 : vector<1x512xf32> to vector<32x512xf32>
    %93 = arith.mulf %90, %92 : vector<32x512xf32>
    %94 = arith.truncf %93 : vector<32x512xf32> to vector<32x512xbf16>
    %c497_i32_43 = arith.constant 497 : i32
    %95 = tpu.dynamic_rotate %68 by %c497_i32_43 dim 1 : vector<32x512xf32>, i32 -> vector<32x512xf32>
    %c6_44 = arith.constant 6 : index
    %c0_45 = arith.constant 0 : index
    %96 = vector.load %arg2[%c6_44, %c0_45] : memref<9x512xf32, #tpu.memory_space<vmem>>, vector<1x512xf32>
    %97 = vector.broadcast %96 : vector<1x512xf32> to vector<32x512xf32>
    %98 = arith.mulf %95, %97 : vector<32x512xf32>
    %99 = arith.truncf %98 : vector<32x512xf32> to vector<32x512xbf16>
    %c496_i32_46 = arith.constant 496 : i32
    %100 = tpu.dynamic_rotate %68 by %c496_i32_46 dim 1 : vector<32x512xf32>, i32 -> vector<32x512xf32>
    %c7_47 = arith.constant 7 : index
    %c0_48 = arith.constant 0 : index
    %101 = vector.load %arg2[%c7_47, %c0_48] : memref<9x512xf32, #tpu.memory_space<vmem>>, vector<1x512xf32>
    %102 = vector.broadcast %101 : vector<1x512xf32> to vector<32x512xf32>
    %103 = arith.mulf %100, %102 : vector<32x512xf32>
    %104 = arith.truncf %103 : vector<32x512xf32> to vector<32x512xbf16>
    %c495_i32_49 = arith.constant 495 : i32
    %105 = tpu.dynamic_rotate %68 by %c495_i32_49 dim 1 : vector<32x512xf32>, i32 -> vector<32x512xf32>
    %c8_50 = arith.constant 8 : index
    %c0_51 = arith.constant 0 : index
    %106 = vector.load %arg2[%c8_50, %c0_51] : memref<9x512xf32, #tpu.memory_space<vmem>>, vector<1x512xf32>
    %107 = vector.broadcast %106 : vector<1x512xf32> to vector<32x512xf32>
    %108 = arith.mulf %105, %107 : vector<32x512xf32>
    %109 = arith.truncf %108 : vector<32x512xf32> to vector<32x512xbf16>
    %110 = tpu.concatenate %73, %78, %83, %88, %89, %94, %99, %104, %109 in 0 : vector<32x512xbf16>, vector<32x512xbf16>, vector<32x512xbf16>, vector<32x512xbf16>, vector<32x512xbf16>, vector<32x512xbf16>, vector<32x512xbf16>, vector<32x512xbf16>, vector<32x512xbf16> -> vector<288x512xbf16>
    %c0_52 = arith.constant 0 : index
    %c0_53 = arith.constant 0 : index
    %111 = vector.load %arg9[%c0_52, %c0_53] : memref<8x288xbf16, #tpu.memory_space<vmem>>, vector<8x288xbf16>
    %cst_54 = arith.constant dense<0.000000e+00> : vector<8x512xf32>
    %112 = tpu.matmul %111, %110, %cst_54 {dimension_numbers = #tpu.dot_dimension_numbers<[1], [0], [0], [1], [0, 0, 1, 1], [], []>} : vector<8x288xbf16>, vector<288x512xbf16>, vector<8x512xf32> -> vector<8x512xf32>
    %c0_55 = arith.constant 0 : index
    %c0_56 = arith.constant 0 : index
    %113 = vector.load %arg10[%c0_55, %c0_56] : memref<8x1xf32, #tpu.memory_space<vmem>>, vector<8x1xf32>
    %114 = vector.broadcast %113 : vector<8x1xf32> to vector<8x512xf32>
    %115 = arith.addf %112, %114 : vector<8x512xf32>
    %116 = vector.extract_strided_slice %115 {offsets = [0, 0], sizes = [4, 512], strides = [1, 1]} : vector<8x512xf32> to vector<4x512xf32>
    %c0_57 = arith.constant 0 : index
    %c0_58 = arith.constant 0 : index
    %117 = vector.load %arg11[%c0_57, %c0_58] : memref<1x512xf32, #tpu.memory_space<vmem>>, vector<1x512xf32>
    %118 = vector.extract_strided_slice %115 {offsets = [4, 0], sizes = [4, 512], strides = [1, 1]} : vector<8x512xf32> to vector<4x512xf32>
    %119 = math.tanh %118 : vector<4x512xf32>
    %120 = vector.broadcast %117 : vector<1x512xf32> to vector<4x512xf32>
    %121 = arith.mulf %120, %119 : vector<4x512xf32>
    %c0_59 = arith.constant 0 : index
    %c0_60 = arith.constant 0 : index
    %122 = vector.load %arg12[%c0_59, %c0_60] : memref<1x512xf32, #tpu.memory_space<vmem>>, vector<1x512xf32>
    %123 = vector.broadcast %122 : vector<1x512xf32> to vector<4x512xf32>
    %124 = arith.addf %121, %123 : vector<4x512xf32>
    %125 = math.exp %124 : vector<4x512xf32>
    %126 = arith.mulf %1, %125 : vector<4x512xf32>
    %127 = vector.broadcast %3 : vector<1x512xf32> to vector<4x512xf32>
    %128 = arith.mulf %116, %127 : vector<4x512xf32>
    %129 = arith.addf %126, %128 : vector<4x512xf32>
    %c0_61 = arith.constant 0 : index
    %c0_62 = arith.constant 0 : index
    %130 = vector.load %arg13[%c0_61, %c0_62] : memref<4x1xf32, #tpu.memory_space<vmem>>, vector<4x1xf32>
    %131 = vector.broadcast %130 : vector<4x1xf32> to vector<4x512xf32>
    %132 = vector.broadcast %3 : vector<1x512xf32> to vector<4x512xf32>
    %133 = arith.mulf %131, %132 : vector<4x512xf32>
    %134 = vector.broadcast %2 : vector<1x512xf32> to vector<4x512xf32>
    %135 = arith.addf %133, %134 : vector<4x512xf32>
    %c0_63 = arith.constant 0 : index
    %c0_64 = arith.constant 0 : index
    %136 = vector.load %arg14[%c0_63, %c0_64] : memref<4x1xf32, #tpu.memory_space<vmem>>, vector<4x1xf32>
    %137 = vector.broadcast %136 : vector<4x1xf32> to vector<4x512xf32>
    %138 = vector.broadcast %3 : vector<1x512xf32> to vector<4x512xf32>
    %139 = arith.mulf %137, %138 : vector<4x512xf32>
    %140 = arith.mulf %129, %135 : vector<4x512xf32>
    %141 = arith.addf %140, %139 : vector<4x512xf32>
    %c0_65 = arith.constant 0 : index
    %c0_66 = arith.constant 0 : index
    %142 = vector.load %arg15[%c0_65, %c0_66] : memref<4x1xf32, #tpu.memory_space<vmem>>, vector<4x1xf32>
    %143 = vector.broadcast %142 : vector<4x1xf32> to vector<4x512xf32>
    %144 = vector.broadcast %3 : vector<1x512xf32> to vector<4x512xf32>
    %145 = arith.mulf %143, %144 : vector<4x512xf32>
    %146 = arith.subf %124, %145 : vector<4x512xf32>
    %147 = tpu.concatenate %141, %146 in 0 : vector<4x512xf32>, vector<4x512xf32> -> vector<8x512xf32>
    %c0_67 = arith.constant 0 : index
    %c0_68 = arith.constant 0 : index
    %c0_69 = arith.constant 0 : index
    %148 = vector.load %arg16[%c0_67, %c0_68, %c0_69] : memref<1x8x512xf32, #tpu.memory_space<vmem>>, vector<1x8x512xf32>
    %149 = vector.shape_cast %148 : vector<1x8x512xf32> to vector<8x512xf32>
    %150 = vector.shape_cast %147 : vector<8x512xf32> to vector<1x8x512xf32>
    tpu.vector_store %arg16[%c0_67, %c0_68, %c0_69], %150 {strides = array<i32>} : memref<1x8x512xf32, #tpu.memory_space<vmem>>, vector<1x8x512xf32>,
    return
  }
  func.func @transform_0(%arg0: i32) -> (i32, i32, i32) {
    %c0_i32 = arith.constant 0 : i32
    %c0_i32_0 = arith.constant 0 : i32
    %c0_i32_1 = arith.constant 0 : i32
    return %arg0, %c0_i32, %c0_i32_0 : i32, i32, i32
  }
  func.func @transform_1(%arg0: i32) -> (i32, i32) {
    %c0_i32 = arith.constant 0 : i32
    %c0_i32_0 = arith.constant 0 : i32
    %c0_i32_1 = arith.constant 0 : i32
    return %c0_i32, %c0_i32_0 : i32, i32
  }
  func.func @transform_2(%arg0: i32) -> (i32, i32) {
    %c0_i32 = arith.constant 0 : i32
    %c0_i32_0 = arith.constant 0 : i32
    %c0_i32_1 = arith.constant 0 : i32
    return %c0_i32, %c0_i32_0 : i32, i32
  }
  func.func @transform_3(%arg0: i32) -> (i32, i32) {
    %c0_i32 = arith.constant 0 : i32
    %c0_i32_0 = arith.constant 0 : i32
    %c0_i32_1 = arith.constant 0 : i32
    return %c0_i32, %c0_i32_0 : i32, i32
  }
  func.func @transform_4(%arg0: i32) -> (i32, i32) {
    %c0_i32 = arith.constant 0 : i32
    %c0_i32_0 = arith.constant 0 : i32
    %c0_i32_1 = arith.constant 0 : i32
    return %c0_i32, %c0_i32_0 : i32, i32
  }
  func.func @transform_5(%arg0: i32) -> (i32, i32) {
    %c0_i32 = arith.constant 0 : i32
    %c0_i32_0 = arith.constant 0 : i32
    %c0_i32_1 = arith.constant 0 : i32
    return %c0_i32, %c0_i32_0 : i32, i32
  }
  func.func @transform_6(%arg0: i32) -> (i32, i32) {
    %c0_i32 = arith.constant 0 : i32
    %c0_i32_0 = arith.constant 0 : i32
    %c0_i32_1 = arith.constant 0 : i32
    return %c0_i32, %c0_i32_0 : i32, i32
  }
  func.func @transform_7(%arg0: i32) -> (i32, i32) {
    %c0_i32 = arith.constant 0 : i32
    %c0_i32_0 = arith.constant 0 : i32
    %c0_i32_1 = arith.constant 0 : i32
    return %c0_i32, %c0_i32_0 : i32, i32
  }
  func.func @transform_8(%arg0: i32) -> (i32, i32) {
    %c0_i32 = arith.constant 0 : i32
    %c0_i32_0 = arith.constant 0 : i32
    %c0_i32_1 = arith.constant 0 : i32
    return %c0_i32, %c0_i32_0 : i32, i32
  }
  func.func @transform_9(%arg0: i32) -> (i32, i32) {
    %c0_i32 = arith.constant 0 : i32
    %c0_i32_0 = arith.constant 0 : i32
    %c0_i32_1 = arith.constant 0 : i32
    return %c0_i32, %c0_i32_0 : i32, i32
  }
  func.func @transform_10(%arg0: i32) -> (i32, i32) {
    %c0_i32 = arith.constant 0 : i32
    %c0_i32_0 = arith.constant 0 : i32
    %c0_i32_1 = arith.constant 0 : i32
    return %c0_i32, %c0_i32_0 : i32, i32
  }
  func.func @transform_11(%arg0: i32) -> (i32, i32) {
    %c0_i32 = arith.constant 0 : i32
    %c0_i32_0 = arith.constant 0 : i32
    %c0_i32_1 = arith.constant 0 : i32
    return %c0_i32, %c0_i32_0 : i32, i32
  }
  func.func @transform_12(%arg0: i32) -> (i32, i32) {
    %c0_i32 = arith.constant 0 : i32
    %c0_i32_0 = arith.constant 0 : i32
    %c0_i32_1 = arith.constant 0 : i32
    return %c0_i32, %c0_i32_0 : i32, i32
  }
  func.func @transform_13(%arg0: i32) -> (i32, i32) {
    %c0_i32 = arith.constant 0 : i32
    %c0_i32_0 = arith.constant 0 : i32
    %c0_i32_1 = arith.constant 0 : i32
    return %c0_i32, %c0_i32_0 : i32, i32
  }
  func.func @transform_14(%arg0: i32) -> (i32, i32) {
    %c0_i32 = arith.constant 0 : i32
    %c0_i32_0 = arith.constant 0 : i32
    %c0_i32_1 = arith.constant 0 : i32
    return %c0_i32, %c0_i32_0 : i32, i32
  }
  func.func @transform_15(%arg0: i32) -> (i32, i32, i32) {
    %c0_i32 = arith.constant 0 : i32
    %c0_i32_0 = arith.constant 0 : i32
    %c0_i32_1 = arith.constant 0 : i32
    return %arg0, %c0_i32, %c0_i32_0 : i32, i32, i32
  }
}

</mosaic_0001>

<bundles_post_ra>
// kernel: tpu_custom_call.1
= control target key start
LH: loop header
LB: loop body
LE: loop exit
PB: predicated region body
PF: predicated region fallthrough
CT: control target
= control target key end

     0   :  { %20 = vsyncpa [#allocation3], 0  ;;  %s3860_s0 = inlined_call_operand.vmem [shape: f32[1,4,512], index: 0, kind: input, shape index: {}]   ;;  %s3861_s1 = inlined_call_operand.hbm [shape: f32[9,512], index: 1, kind: input, shape index: {}]   ;;  %s3862_s2 = inlined_call_operand.hbm [shape: f32[1,512], index: 2, kind: input, shape index: {}]   ;;  %s3863_s3 = inlined_call_operand.hbm [shape: f32[1,512], index: 3, kind: input, shape index: {}]   ;;  %s3864_s4 = inlined_call_operand.vmem [shape: f32[4,1], index: 4, kind: input, shape index: {}]   ;;  %s3865_s5 = inlined_call_operand.vmem [shape: f32[4,1], index: 5, kind: input, shape index: {}]   ;;  %s3866_s6 = inlined_call_operand.vmem [shape: bf16[32,80], index: 6, kind: input, shape index: {}]   ;;  %s3867_s7 = inlined_call_operand.hbm [shape: f32[32,512], index: 7, kind: input, shape index: {}]   ;;  %s3868_s8 = inlined_call_operand.vmem [shape: bf16[8,288], index: 8, kind: input, shape index: {}]   ;;  %s3869_s9 = inlined_call_operand.vmem [shape: f32[8,1], index: 9, kind: input, shape index: {}]   ;;  %s3870_s10 = inlined_call_operand.vmem [shape: f32[1,512], index: 10, kind: input, shape index: {}]   ;;  %s3871_s11 = inlined_call_operand.vmem [shape: f32[1,512], index: 11, kind: input, shape index: {}]   ;;  %s3872_s12 = inlined_call_operand.vmem [shape: f32[4,1], index: 12, kind: input, shape index: {}]   ;;  %s3873_s13 = inlined_call_operand.vmem [shape: f32[4,1], index: 13, kind: input, shape index: {}]   ;;  %s3874_s14 = inlined_call_operand.vmem [shape: f32[4,1], index: 14, kind: input, shape index: {}]   ;;  %s3875_s15 = inlined_call_operand.hbm [shape: f32[1,8,512], index: 15, kind: output, shape index: {}]  }
   0x1   :  { %21 = vsyncpa [#allocation6], 0 }
   0x2   :  { %22 = vsyncpa [#allocation9], 0 }
   0x3   :  { %23 = vsyncpa [#allocation4], 0  ;;  %s1976_s18 = smov [#allocation5]   ;;  %s1977_s20 = smov [#allocation2]  }
   0x4   :  { %s44_s19 = sshll.u32 %s1976_s18, 4  ;;  %s31_s21 = sshll.u32 %s1977_s20, 4  ;;  %s45_s19 = int_to_ptr.vmem [resolvable:$true] %s44_s19  ;;  %s2073_s21 = int_to_ptr.vmem [resolvable:$true] %s31_s21 }
   0x5   :  { %s1858_s24 = scalar_lea.hbm %s3862_s2, 64 }
   0x6   :  { %p1859_p0 = scmp.ne.s32.totalorder %s3862_s2, %s1858_s24  ;;  %p1862_p1 = scmp.lt.u32.totalorder %s1858_s24, %s3862_s2 }
   0x8   :  { %p1864_p2 = pnand %p1862_p1, %p1859_p0 }
   0xa   :  { %1867 = shalt.err (!%p1864_p2)
}
   0xb   :  { %s1868_s29 = scalar_lea.vmem %s45_s19, 64  ;;  %p1873_p4 = scmp.lt.s32.totalorder %s45_s19, %s45_s19 }
   0xc   :  { %p1869_p3 = scmp.ne.s32.totalorder %s45_s19, %s1868_s29  ;;  %p1874_p5 = scmp.lt.s32.totalorder %s1868_s29, %s1868_s29 }
   0xe   :  { %p1875_p6 = por %p1874_p5, %p1873_p4 }
  0x10   :  { %p1876_p7 = pnand %p1875_p6, %p1869_p3 }
  0x12   :  { %1879 = shalt.err (!%p1876_p7)
}
  0x13   :  { %47 = dma.hbm_to_vmem [thread:$0]  %s3862_s2, 64, %s45_s19, [#allocation6]  }
  0x14   :  { %s1880_s20 = scalar_lea.hbm %s3861_s1, 1024 }
  0x15   :  { %p1881_p8 = scmp.ne.s32.totalorder %s3861_s1, %s1880_s20  ;;  %p1884_p9 = scmp.lt.u32.totalorder %s1880_s20, %s3861_s1 }
  0x17   :  { %p1886_p10 = pnand %p1884_p9, %p1881_p8 }
  0x19   :  { %1889 = shalt.err (!%p1886_p10)
}
  0x1a   :  { %s1890_s26 = scalar_lea.vmem %s2073_s21, 1024  ;;  %p1895_p12 = scmp.lt.s32.totalorder %s2073_s21, %s2073_s21 }
  0x1b   :  { %p1891_p11 = scmp.ne.s32.totalorder %s2073_s21, %s1890_s26  ;;  %p1896_p13 = scmp.lt.s32.totalorder %s1890_s26, %s1890_s26 }
  0x1d   :  { %p1897_p0 = por %p1896_p13, %p1895_p12 }
  0x1f   :  { %p1898_p1 = pnand %p1897_p0, %p1891_p11 }
  0x21   :  { %1901 = shalt.err (!%p1898_p1)
}
  0x22   :  { %s1978_s2 = smov 512   ;;  %s1979_s19 = smov 32  }
  0x23   :  { %37 = dma.hbm_to_vmem [thread:$0]  %s3861_s1, 1024, %s2073_s21, [#allocation3], %s1978_s2, %s1978_s2, %s1979_s19  }
  0x24   :  { %s1980_s29 = smov [#allocation7]   ;;  %s1981_s16 = smov [#allocation8]  }
  0x25   :  { %s54_s30 = sshll.u32 %s1980_s29, 4  ;;  %s69_s17 = sshll.u32 %s1981_s16, 4  ;;  %s55_s30 = int_to_ptr.vmem [resolvable:$true] %s54_s30  ;;  %s2107_s17 = int_to_ptr.vmem [resolvable:$true] %s69_s17 }
  0x26   :  { %s1902_s22 = scalar_lea.hbm %s3863_s3, 64 }
  0x27   :  { %p1903_p2 = scmp.ne.s32.totalorder %s3863_s3, %s1902_s22  ;;  %p1906_p3 = scmp.lt.u32.totalorder %s1902_s22, %s3863_s3 }
  0x29   :  { %p1908_p4 = pnand %p1906_p3, %p1903_p2 }
  0x2b   :  { %1911 = shalt.err (!%p1908_p4)
}
  0x2c   :  { %s1912_s1 = scalar_lea.vmem %s55_s30, 64  ;;  %p1917_p6 = scmp.lt.s32.totalorder %s55_s30, %s55_s30 }
  0x2d   :  { %p1913_p5 = scmp.ne.s32.totalorder %s55_s30, %s1912_s1  ;;  %p1918_p7 = scmp.lt.s32.totalorder %s1912_s1, %s1912_s1 }
  0x2f   :  { %p1919_p8 = por %p1918_p7, %p1917_p6 }
  0x31   :  { %p1920_p9 = pnand %p1919_p8, %p1913_p5 }
  0x33   :  { %1923 = shalt.err (!%p1920_p9)
}
  0x34   :  { %57 = dma.hbm_to_vmem [thread:$0]  %s3863_s3, 64, %s55_s30, [#allocation6]  }
  0x35   :  { %s1924_s16 = scalar_lea.hbm %s3867_s7, 2048 }
  0x36   :  { %p1925_p10 = scmp.ne.s32.totalorder %s3867_s7, %s1924_s16  ;;  %p1928_p11 = scmp.lt.u32.totalorder %s1924_s16, %s3867_s7 }
  0x38   :  { %p1930_p12 = pnand %p1928_p11, %p1925_p10 }
  0x3a   :  { %1933 = shalt.err (!%p1930_p12)
}
  0x3b   :  { %s1934_s24 = scalar_lea.vmem %s2107_s17, 2048  ;;  %p1939_p0 = scmp.lt.s32.totalorder %s2107_s17, %s2107_s17 }
  0x3c   :  { %p1935_p13 = scmp.ne.s32.totalorder %s2107_s17, %s1934_s24  ;;  %p1940_p1 = scmp.lt.s32.totalorder %s1934_s24, %s1934_s24 }
  0x3e   :  { %p1941_p2 = por %p1940_p1, %p1939_p0 }
  0x40   :  { %p1942_p3 = pnand %p1941_p2, %p1935_p13 }
  0x42   :  { %1945 = shalt.err (!%p1942_p3)
}
  0x43   :  { %75 = dma.hbm_to_vmem [thread:$0]  %s3867_s7, 2048, %s2107_s17, [#allocation9], %s1978_s2, %s1978_s2, %s1979_s19  }
  0x44   :  { %1968 = dma.done.wait [#allocation3], 1024  }
  0x45   :  { %1969 = vsyncadd [#allocation3], 4294966272 }
  0x46   :  { %1970 = dma.done.wait [#allocation6], 128  }
  0x47   :  { %1971 = vsyncadd [#allocation6], 4294967168 }
  0x48   :  { %1972 = dma.done.wait [#allocation9], 2048  }
  0x49   :  { %1973 = vsyncadd [#allocation9], 4294965248  ;;  %v3876_v0 = vmov 0   ;;  %v107_v1 = vld [vmem:[%s3864_s4] sm:$0xf]  ;;  %v114_v3 = vlaneseq  ;;  %v104_v24 = vld [vmem:[%s3860_s0 + $0x8] sm:$0xff] }
  0x4a   :  { %1833 = vset.pattern.permute.xlu0 %v3876_v0  ;;  %721 = vmatprep.mubr.bf16.mxu0 %v3876_v0  ;;  %v148_v2 = vld [vmem:[%s3865_s5] sm:$0xf]  ;;  %v1983_v5 = vmov 839922192   ;;  %vm181_vm0 = vcmask 1043456   ;;  %s1984_s1 = smov 16  }
  0x4b   :  { %774 = vmatprep.mubr.bf16.mxu1 %v3876_v0  ;;  %1834 = vset.pattern.permute.xlu1 %v3876_v0  ;;  %v115_v4 = vshrl.u32 %v114_v3, 7  ;;  %v154_v6 = vunpack.c.l.s4 %v1983_v5  ;;  %v105_v11 = vld [vmem:[#allocation5] sm:$0xf]  ;;  %s1985_s21 = smov 17   ;;  %s1986_s27 = smov 1   ;;  %v2259_v47 = vand.u32 127, %v114_v3 }
  0x4c   :  { %110 = vperm.xlu0 %1833, %v107_v1   ;;  %v103_v23 = vld [vmem:[%s3860_s0] sm:$0xff]  ;;  %s1987_s28 = smov 15   ;;  %s1988_s29 = smov 127   ;;  %vm682_vm9 = vcmask 654336   ;;  %vm1413_vm10 = vcmask 261120  }
  0x4d   :  { %v2152_v7 = vsub.s32 0, %v115_v4  ;;  %v2154_v8 = vsub.s32 1, %v115_v4  ;;  %v2156_v9 = vsub.s32 2, %v115_v4  ;;  %v2158_v10 = vsub.s32 3, %v115_v4  ;;  %s1989_s16 = smov 112   ;;  %s1990_s18 = smov 113  }
  0x4e   :  { %v155_v12 = vunpack.c.0.s8 %v154_v6  ;;  %s1991_s20 = smov 111   ;;  %v2263_v49 = vld [vmem:[#allocation2 + $0x1] ss:$8 sm:$0xf]  ;;  %vm239_vm1 = vcmp.lt.s32.totalorder %v2259_v47, 16  ;;  %vm196_vm2 = vcmp.lt.s32.totalorder %v2259_v47, 17 }
  0x4f   :  { %4015 = vst [vmem:[#allocation15_spill] sm:$0xff] %v2152_v7  ;;  %4016 = vst [vmem:[#allocation16_spill] sm:$0xff] %v2154_v8  ;;  %v2161_v13 = vrot.slane %v105_v11, %v2152_v7  ;;  %v2164_v14 = vrot.slane %v105_v11, %v2154_v8  ;;  %v2167_v15 = vrot.slane %v105_v11, %v2156_v9  ;;  %v201_v57 = vld [vmem:[#allocation2] ss:$8 sm:$0xf]  ;;  %vm327_vm3 = vcmp.lt.s32.totalorder %v2259_v47, 1 }
  0x50   :  { %151 = vperm.xlu0 %1833, %v148_v2   ;;  %4017 = vst [vmem:[#allocation17_spill] sm:$0xff] %v2156_v9  ;;  %4018 = vst [vmem:[#allocation18_spill] sm:$0xff] %v2158_v10  ;;  %v2170_v16 = vrot.slane %v105_v11, %v2158_v10  ;;  %v158_v18 = vsub.s32 %v155_v12, %v115_v4  ;;  %v2268_v51 = vrot.slane %v2263_v49, %v2158_v10 }
  0x51   :  { %4019 = vst [vmem:[#allocation19_spill] sm:$0xff] %v2161_v13  ;;  %4020 = vst [vmem:[#allocation20_spill] sm:$0xff] %v2164_v14  ;;  %v2274_v53 = vrot.slane %v2263_v49, %v2156_v9  ;;  %v2288_v60 = vrot.slane %v201_v57, %v2156_v9  ;;  %v2293_v63 = vrot.slane %v201_v57, %v2158_v10  ;;  %vm283_vm4 = vcmp.lt.s32.totalorder %v2259_v47, 15 }
  0x52   :  { %4021 = vst [vmem:[#allocation21_spill] sm:$0xff] %v2167_v15  ;;  %4022 = vst [vmem:[#allocation22_spill] sm:$0xff] %v2170_v16  ;;  %vm375_vm5 = vcmp.lt.s32.totalorder %v2259_v47, 127  ;;  %vm463_vm6 = vcmp.lt.s32.totalorder %v2259_v47, 112  ;;  %vm419_vm7 = vcmp.lt.s32.totalorder %v2259_v47, 113  ;;  %vm507_vm8 = vcmp.lt.s32.totalorder %v2259_v47, 111 }
  0x53   :  { %v106_v47 = vld [vmem:[#allocation7] sm:$0xf] }
  0xcb   :  { %v111_v17 = vpop.permute.xlu0 %110 }
  0xcc   :  { %v134_v19 = vmul.f32 %v2161_v13, %v111_v17  ;;  %v135_v20 = vmul.f32 %v2164_v14, %v111_v17  ;;  %v136_v21 = vmul.f32 %v2167_v15, %v111_v17  ;;  %v137_v22 = vmul.f32 %v2170_v16, %v111_v17 }
  0xce   :  { %v142_v25 = vcombine.low %v134_v19, %v135_v20  ;;  %v143_v26 = vcombine.low %v136_v21, %v137_v22 }
  0xcf   :  { %v152_v27 = vpop.permute.xlu0 %151 }
  0xd0   :  { %v146_v28 = vmul.f32 %v142_v25, %v103_v23  ;;  %v147_v29 = vmul.f32 %v143_v26, %v104_v24  ;;  %v159_v30 = vrot.slane %v152_v27, %v158_v18  ;;  %v333_v24 = vld [vmem:[#allocation2 + $0x3] ss:$8 sm:$0xf] }
  0xd1   :  { %v2313_v26 = vrot.slane %v333_v24, %v2158_v10 }
  0xd2   :  { %v161_v31 = vadd.f32 %v159_v30, %v146_v28  ;;  %v162_v32 = vadd.f32 %v159_v30, %v147_v29  ;;  %v2318_v28 = vrot.slane %v333_v24, %v2156_v9 }
  0xd3   :  { %4023 = vst [vmem:[#allocation23_spill] sm:$0xff] %v2313_v26 }
  0xd4   :  { %v163_v33 = vmax.f32 %v161_v31, 0.0  ;;  %v164_v34 = vmax.f32 %v162_v32, 0.0  ;;  %v165_v35 = vsub.f32 0.0, %v161_v31  ;;  %v166_v36 = vsub.f32 0.0, %v162_v32  ;;  %4024 = vst [vmem:[#allocation24_spill] sm:$0xff] %v2318_v28 }
  0xd5   :  { %v289_v32 = vld [vmem:[#allocation2 + $0x2] ss:$8 sm:$0xf] }
  0xd6   :  { %v167_v37 = vmax.f32 %v165_v35, 0.0  ;;  %v168_v38 = vmax.f32 %v166_v36, 0.0  ;;  %v171_v39 = vcombine.high %v163_v33, %v163_v33  ;;  %v172_v40 = vcombine.high %v164_v34, %v164_v34 }
  0xd7   :  { %v2332_v35 = vrot.slane %v289_v32, %v2156_v9 }
  0xd8   :  { %v178_v41 = vcombine.low %v168_v38, %v168_v38  ;;  %v2183_v42 = vsel %vm181_vm0, %v171_v39, %v167_v37  ;;  %v177_v43 = vcombine.low %v167_v37, %v167_v37  ;;  %v2193_v45 = vsel %vm181_vm0, %v172_v40, %v168_v38 }
  0xd9   :  { %233 = vrot.lane.b32.xlu1 %v2183_v42, %s1984_s1  ;;  %v2337_v38 = vrot.slane %v289_v32, %v2158_v10 }
  0xda   :  { %v2188_v44 = vsel %vm181_vm0, %v164_v34, %v178_v41  ;;  %v2198_v46 = vsel %vm181_vm0, %v163_v33, %v177_v43 }
  0xdb   :  { %235 = vrot.lane.b32.xlu0 %v2188_v44, %s1984_s1 }
  0xdd   :  { %237 = vrot.lane.b32.xlu1 %v2193_v45, %s1984_s1 }
  0xdf   :  { %186 = vrot.lane.b32.xlu0 %v2198_v46, %s1985_s21 }
  0xe1   :  { %188 = vrot.lane.b32.xlu1 %v2183_v42, %s1985_s21 }
  0xe3   :  { %190 = vrot.lane.b32.xlu0 %v2188_v44, %s1985_s21 }
  0xe5   :  { %192 = vrot.lane.b32.xlu1 %v2193_v45, %s1985_s21 }
  0xe7   :  { %319 = vrot.lane.b32.xlu0 %v2198_v46, %s1986_s27 }
  0xe9   :  { %321 = vrot.lane.b32.xlu1 %v2183_v42, %s1986_s27 }
  0xeb   :  { %323 = vrot.lane.b32.xlu0 %v2188_v44, %s1986_s27 }
  0xed   :  { %325 = vrot.lane.b32.xlu1 %v2193_v45, %s1986_s27 }
  0xef   :  { %275 = vrot.lane.b32.xlu0 %v2198_v46, %s1987_s28 }
  0xf1   :  { %277 = vrot.lane.b32.xlu1 %v2183_v42, %s1987_s28 }
  0xf3   :  { %279 = vrot.lane.b32.xlu0 %v2188_v44, %s1987_s28 }
  0xf5   :  { %281 = vrot.lane.b32.xlu1 %v2193_v45, %s1987_s28 }
  0xf7   :  { %367 = vrot.lane.b32.xlu0 %v2198_v46, %s1988_s29 }
  0xf9   :  { %369 = vrot.lane.b32.xlu1 %v2183_v42, %s1988_s29 }
  0xfb   :  { %371 = vrot.lane.b32.xlu0 %v2188_v44, %s1988_s29 }
  0xfd   :  { %373 = vrot.lane.b32.xlu1 %v2193_v45, %s1988_s29 }
  0xff   :  { %455 = vrot.lane.b32.xlu0 %v2198_v46, %s1989_s16 }
 0x101   :  { %457 = vrot.lane.b32.xlu1 %v2183_v42, %s1989_s16 }
 0x103   :  { %459 = vrot.lane.b32.xlu0 %v2188_v44, %s1989_s16 }
 0x105   :  { %231 = vrot.lane.b32.xlu1 %v2198_v46, %s1984_s1 }
 0x107   :  { %411 = vrot.lane.b32.xlu0 %v2198_v46, %s1990_s18 }
 0x109   :  { %461 = vrot.lane.b32.xlu1 %v2193_v45, %s1989_s16 }
 0x10b   :  { %415 = vrot.lane.b32.xlu0 %v2188_v44, %s1990_s18 }
 0x10d   :  { %413 = vrot.lane.b32.xlu1 %v2183_v42, %s1990_s18 }
 0x10f   :  { %499 = vrot.lane.b32.xlu0 %v2198_v46, %s1991_s20 }
 0x111   :  { %417 = vrot.lane.b32.xlu1 %v2193_v45, %s1990_s18 }
 0x113   :  { %503 = vrot.lane.b32.xlu0 %v2188_v44, %s1991_s20 }
 0x115   :  { %501 = vrot.lane.b32.xlu1 %v2183_v42, %s1991_s20 }
 0x119   :  { %505 = vrot.lane.b32.xlu1 %v2193_v45, %s1991_s20 }
 0x14b   :  { %v2261_v48 = vpop.permute.xlu1 %233 }
 0x14d   :  { %v236_v50 = vpop.permute.xlu0 %235 }
 0x14e   :  { %v241_v55 = vsel %vm239_vm1, %v2261_v48, %v236_v50 }
 0x14f   :  { %v2270_v52 = vpop.permute.xlu1 %237  ;;  %v269_v61 = vmul.f32 %v2274_v53, %v241_v55 }
 0x150   :  { %v240_v54 = vsel %vm239_vm1, %v236_v50, %v2270_v52 }
 0x151   :  { %v2282_v56 = vpop.permute.xlu0 %186  ;;  %v270_v58 = vmul.f32 %v2268_v51, %v240_v54  ;;  %v273_v5 = vpack.c.bf16 %v269_v61, %v269_v61 }
 0x153   :  { %v2285_v59 = vpop.permute.xlu1 %188  ;;  %v274_v4 = vpack.c.bf16 %v270_v58, %v270_v58  ;;  %v549_v21 = vrot.slane %v273_v5, 4  ;;  %v2353_v5 = vrot.slane %v201_v57, %v2152_v7 }
 0x155   :  { %v191_v62 = vpop.permute.xlu0 %190  ;;  %v550_v20 = vrot.slane %v274_v4, 4  ;;  %v2350_v4 = vrot.slane %v201_v57, %v2154_v8 }
 0x156   :  { %v198_v1 = vsel %vm196_vm2, %v2285_v59, %v191_v62 }
 0x157   :  { %v225_v2 = vmul.f32 %v2288_v60, %v198_v1  ;;  %v2299_v3 = vpop.permute.xlu1 %192  ;;  %4025 = vst [vmem:[#allocation25_spill] sm:$0xff] %v2350_v4 }
 0x158   :  { %v197_v6 = vsel %vm196_vm2, %v191_v62, %v2299_v3 }
 0x159   :  { %v226_v11 = vmul.f32 %v2293_v63, %v197_v6  ;;  %v2305_v12 = vpop.permute.xlu0 %319  ;;  %v229_v17 = vpack.c.bf16 %v225_v2, %v225_v2 }
 0x15b   :  { %v2307_v18 = vpop.permute.xlu1 %321  ;;  %v230_v19 = vpack.c.bf16 %v226_v11, %v226_v11  ;;  %v585_v25 = vsel %vm181_vm0, %v229_v17, %v549_v21  ;;  %v381_v11 = vld [vmem:[#allocation2 + $0x5] ss:$8 sm:$0xf] }
 0x15c   :  { %v2360_v21 = vrot.slane %v381_v11, %v2158_v10 }
 0x15d   :  { %v324_v22 = vpop.permute.xlu0 %323  ;;  %v589_v23 = vsel %vm181_vm0, %v230_v19, %v550_v20  ;;  %v2357_v20 = vrot.slane %v381_v11, %v2156_v9 }
 0x15e   :  { %742 = vmatprep.subr.bf16.mxu1 %v589_v23  ;;  %v329_v30 = vsel %vm327_vm3, %v2307_v18, %v324_v22  ;;  %4027 = vst [vmem:[#allocation27_spill] sm:$0xff] %v2360_v21  ;;  %v2365_v23 = vrot.slane %v333_v24, %v2154_v8 }
 0x15f   :  { %743 = vmatpush1.bf16.msra.mxu1 %v585_v25  ;;  %v2315_v27 = vpop.permute.xlu1 %325  ;;  %v357_v36 = vmul.f32 %v2318_v28, %v329_v30  ;;  %4026 = vst [vmem:[#allocation26_spill] sm:$0xff] %v2357_v20  ;;  %v365_v25 = vpack.c.bf16 %v2188_v44, %v2188_v44  ;;  %v2373_v30 = vrot.slane %v333_v24, %v2152_v7 }
 0x160   :  { %v328_v29 = vsel %vm327_vm3, %v324_v22, %v2315_v27  ;;  %v366_v22 = vpack.c.bf16 %v2193_v45, %v2193_v45  ;;  %v2385_v44 = vrot.slane %v381_v11, %v2152_v7 }
 0x161   :  { %v2326_v31 = vpop.permute.xlu0 %275  ;;  %v358_v33 = vmul.f32 %v2313_v26, %v328_v29  ;;  %v361_v50 = vpack.c.bf16 %v357_v36, %v357_v36  ;;  %4028 = vst [vmem:[#allocation28_spill] sm:$0xff] %v2373_v30  ;;  %v469_v36 = vld [vmem:[#allocation2 + $0x7] ss:$8 sm:$0xf] }
 0x162   :  { %4029 = vst [vmem:[#allocation29_spill] sm:$0xff] %v2385_v44  ;;  %v2429_v0 = vrot.slane %v469_v36, %v2156_v9 }
 0x163   :  { %v2329_v34 = vpop.permute.xlu1 %277  ;;  %v362_v40 = vpack.c.bf16 %v358_v33, %v358_v33  ;;  %v557_v6 = vrot.slane %v361_v50, 4  ;;  %v2376_v33 = vrot.slane %v289_v32, %v2154_v8  ;;  %v2396_v50 = vrot.slane %v381_v11, %v2154_v8 }
 0x164   :  { %v199_v11 = vsel %vm196_vm2, %v2282_v56, %v2285_v59  ;;  %4033 = vst [vmem:[#allocation33_spill] sm:$0xff] %v2429_v0  ;;  %v286_v29 = vsel %vm283_vm4, %v2326_v31, %v2329_v34 }
 0x165   :  { %v280_v37 = vpop.permute.xlu0 %279  ;;  %v558_v62 = vrot.slane %v362_v40, 4  ;;  %4030 = vst [vmem:[#allocation30_spill] sm:$0xff] %v2396_v50 }
 0x166   :  { %v285_v39 = vsel %vm283_vm4, %v2329_v34, %v280_v37 }
 0x167   :  { %v313_v41 = vmul.f32 %v2332_v35, %v285_v39  ;;  %v2343_v43 = vpop.permute.xlu1 %281  ;;  %v2382_v39 = vrot.slane %v289_v32, %v2152_v7 }
 0x168   :  { %v284_v54 = vsel %vm283_vm4, %v280_v37, %v2343_v43 }
 0x169   :  { %v314_v55 = vmul.f32 %v2337_v38, %v284_v54  ;;  %v368_v58 = vpop.permute.xlu0 %367  ;;  %v317_v61 = vpack.c.bf16 %v313_v41, %v313_v41  ;;  %v330_v41 = vsel %vm327_vm3, %v2305_v12, %v2307_v18  ;;  %v2413_v18 = vrot.slane %v2263_v49, %v2152_v7 }
 0x16b   :  { %v318_v1 = vpack.c.bf16 %v314_v55, %v314_v55  ;;  %v370_v2 = vpop.permute.xlu1 %369  ;;  %v601_v57 = vsel %vm181_vm0, %v317_v61, %v557_v6  ;;  %v2402_v61 = vld [vmem:[#allocation2 + $0x6] ss:$8 sm:$0xf]  ;;  %v2417_v6 = vrot.slane %v2263_v49, %v2154_v8  ;;  %v2432_v49 = vrot.slane %v469_v36, %v2158_v10 }
 0x16c   :  { %v2436_v37 = vrot.slane %v2402_v61, %v2152_v7 }
 0x16d   :  { %v372_v17 = vpop.permute.xlu0 %371  ;;  %v605_v19 = vsel %vm181_vm0, %v318_v1, %v558_v62  ;;  %v2406_v62 = vrot.slane %v469_v36, %v2152_v7  ;;  %v2409_v1 = vrot.slane %v469_v36, %v2154_v8  ;;  %4034 = vst [vmem:[#allocation34_spill] sm:$0xff] %v2432_v49  ;;  %v224_v36 = vmul.f32 %v2350_v4, %v199_v11 }
 0x16e   :  { %744 = vmatprep.subr.bf16.mxu1 %v605_v19  ;;  %v200_v19 = vsel %vm196_vm2, %v2299_v3, %v2282_v56  ;;  %4035 = vst [vmem:[#allocation35_spill] sm:$0xff] %v2436_v37  ;;  %v331_v56 = vsel %vm327_vm3, %v2315_v27, %v2305_v12  ;;  %v377_v12 = vsel %vm375_vm5, %v370_v2, %v372_v17 }
 0x16f   :  { %745 = vmatpush1.bf16.msra.mxu1 %v601_v57  ;;  %v374_v45 = vpop.permute.xlu1 %373  ;;  %4031 = vst [vmem:[#allocation31_spill] sm:$0xff] %v2406_v62  ;;  %4032 = vst [vmem:[#allocation32_spill] sm:$0xff] %v2409_v1  ;;  %v287_v27 = vsel %vm283_vm4, %v2343_v43, %v2326_v31  ;;  %v355_v15 = vmul.f32 %v2373_v30, %v331_v56  ;;  %v312_v31 = vmul.f32 %v2376_v33, %v286_v29 }
 0x170   :  { %v376_v24 = vsel %vm375_vm5, %v372_v17, %v374_v45  ;;  %v379_v40 = vsel %vm375_vm5, %v374_v45, %v368_v58  ;;  %v404_v43 = vmul.f32 %v2396_v50, %v377_v12  ;;  %v2478_v56 = vrot.slane %v2402_v61, %v2156_v9 }
 0x171   :  { %v405_v32 = vmul.f32 %v2357_v20, %v376_v24  ;;  %v406_v54 = vmul.f32 %v2360_v21, %v379_v40  ;;  %v2400_v55 = vpop.permute.xlu0 %455  ;;  %v356_v40 = vmul.f32 %v2365_v23, %v330_v41  ;;  %v2445_v41 = vrot.slane %v2402_v61, %v2154_v8 }
 0x172   :  { %4037 = vst [vmem:[#allocation37_spill] sm:$0xff] %v2478_v56 }
 0x173   :  { %v409_v57 = vpack.c.bf16 %v405_v32, %v405_v32  ;;  %v410_v45 = vpack.c.bf16 %v406_v54, %v406_v54  ;;  %v458_v24 = vpop.permute.xlu1 %457  ;;  %4036 = vst [vmem:[#allocation36_spill] sm:$0xff] %v2445_v41  ;;  %v223_v54 = vmul.f32 %v2353_v5, %v200_v19  ;;  %v360_v16 = vpack.c.bf16 %v356_v40, %v356_v40 }
 0x175   :  { %v565_v59 = vrot.slane %v409_v57, 4  ;;  %v566_v3 = vrot.slane %v410_v45, 4  ;;  %v460_v32 = vpop.permute.xlu0 %459  ;;  %v378_v57 = vsel %vm375_vm5, %v368_v58, %v370_v2  ;;  %v227_v12 = vpack.c.bf16 %v223_v54, %v223_v54 }
 0x176   :  { %v403_v40 = vmul.f32 %v2385_v44, %v378_v57  ;;  %v408_v57 = vpack.c.bf16 %v404_v43, %v404_v43  ;;  %v466_v54 = vsel %vm463_vm6, %v2400_v55, %v458_v24  ;;  %v513_v43 = vld [vmem:[#allocation2 + $0x20] ss:$8 sm:$0xf] }
 0x177   :  { %v232_v45 = vpop.permute.xlu1 %231  ;;  %v621_v11 = vsel %vm181_vm0, %v366_v22, %v566_v3  ;;  %v617_v19 = vsel %vm181_vm0, %v365_v25, %v565_v59  ;;  %v311_v25 = vmul.f32 %v2382_v39, %v287_v27  ;;  %v316_v27 = vpack.c.bf16 %v312_v31, %v312_v31 }
 0x178   :  { %v242_v34 = vsel %vm239_vm1, %v232_v45, %v2261_v48  ;;  %v243_v17 = vsel %vm239_vm1, %v2270_v52, %v232_v45  ;;  %746 = vmatprep.subr.bf16.mxu1 %v621_v11  ;;  %v228_v48 = vpack.c.bf16 %v224_v36, %v224_v36  ;;  %v465_v52 = vsel %vm463_vm6, %v458_v24, %v460_v32 }
 0x179   :  { %v267_v58 = vmul.f32 %v2413_v18, %v243_v17  ;;  %v268_v2 = vmul.f32 %v2417_v6, %v242_v34  ;;  %v412_v22 = vpop.permute.xlu0 %411  ;;  %747 = vmatpush1.bf16.msra.mxu1 %v617_v19  ;;  %v556_v45 = vrot.slane %v360_v16, 4  ;;  %v359_v11 = vpack.c.bf16 %v355_v15, %v355_v15 }
 0x17a   :  { %v315_v13 = vpack.c.bf16 %v311_v25, %v311_v25  ;;  %v407_v21 = vpack.c.bf16 %v403_v40, %v403_v40  ;;  %v492_v15 = vmul.f32 %v2409_v1, %v465_v52  ;;  %v564_v24 = vrot.slane %v408_v57, 4 }
 0x17b   :  { %v271_v29 = vpack.c.bf16 %v267_v58, %v267_v58  ;;  %v462_v59 = vpop.permute.xlu1 %461  ;;  %v272_v3 = vpack.c.bf16 %v268_v2, %v268_v2 }
 0x17c   :  { %v464_v19 = vsel %vm463_vm6, %v460_v32, %v462_v59  ;;  %v467_v36 = vsel %vm463_vm6, %v462_v59, %v2400_v55  ;;  %v555_v59 = vrot.slane %v359_v11, 4  ;;  %v2499_v55 = vrot.slane %v2402_v61, %v2158_v10 }
 0x17d   :  { %v416_v34 = vpop.permute.xlu0 %415  ;;  %v548_v17 = vrot.slane %v272_v3, 4  ;;  %v547_v14 = vrot.slane %v271_v29, 4  ;;  %v493_v16 = vmul.f32 %v2429_v0, %v464_v19  ;;  %v494_v32 = vmul.f32 %v2432_v49, %v467_v36 }
 0x17e   :  { %4038 = vst [vmem:[#allocation38_spill] sm:$0xff] %v2499_v55  ;;  %v563_v29 = vrot.slane %v407_v21, 4  ;;  %v491_v3 = vmul.f32 %v2406_v62, %v466_v54  ;;  %v2508_v61 = vrot.slane %v513_v43, %v2154_v8  ;;  %v593_v57 = vsel %vm181_vm0, %v315_v13, %v555_v59  ;;  %v665_v62 = vld [vmem:[#allocation8 + $0x48] sm:$0xff] }
 0x17f   :  { %v414_v58 = vpop.permute.xlu1 %413  ;;  %v581_v2 = vsel %vm181_vm0, %v228_v48, %v548_v17  ;;  %v577_v31 = vsel %vm181_vm0, %v227_v12, %v547_v14  ;;  %v597_v14 = vsel %vm181_vm0, %v316_v27, %v556_v45  ;;  %v496_v12 = vpack.c.bf16 %v492_v15, %v492_v15 }
 0x180   :  { %v421_v25 = vsel %vm419_vm7, %v414_v58, %v416_v34  ;;  %689 = vmatprep.subr.bf16.mxu0 %v581_v2  ;;  %v422_v40 = vsel %vm419_vm7, %v412_v22, %v414_v58  ;;  %4039 = vst [vmem:[#allocation39_spill] sm:$0xff] %v2508_v61  ;;  %v497_v11 = vpack.c.bf16 %v493_v16, %v493_v16 }
 0x181   :  { %v448_v48 = vmul.f32 %v2445_v41, %v421_v25  ;;  %v500_v52 = vpop.permute.xlu0 %499  ;;  %690 = vmatpush1.bf16.msra.mxu0 %v577_v31  ;;  %v498_v19 = vpack.c.bf16 %v494_v32, %v494_v32  ;;  %v2512_v17 = vrot.slane %v513_v43, %v2152_v7  ;;  %v447_v58 = vmul.f32 %v2436_v37, %v422_v40 }
 0x182   :  { %691 = vmatprep.subr.bf16.mxu0 %v597_v14  ;;  %v4041_v13 = vpack.c.bf16 %v2183_v42, %v2183_v42  ;;  %v2526_v16 = vrot.slane %v513_v43, %v2158_v10  ;;  %v495_v32 = vpack.c.bf16 %v491_v3, %v491_v3  ;;  %v572_v31 = vrot.slane %v496_v12, 4 }
 0x183   :  { %v418_v36 = vpop.permute.xlu1 %417  ;;  %4040 = vst [vmem:[#allocation40_spill] sm:$0xff] %v2512_v17  ;;  %v452_v2 = vpack.c.bf16 %v448_v48, %v448_v48  ;;  %v2533_v59 = vrot.slane %v513_v43, %v2156_v9  ;;  %v573_v25 = vrot.slane %v497_v11, 4  ;;  %v574_v40 = vrot.slane %v498_v19, 4 }
 0x184   :  { %v420_v21 = vsel %vm419_vm7, %v416_v34, %v418_v36  ;;  %v423_v45 = vsel %vm419_vm7, %v418_v36, %v412_v22  ;;  %v613_v15 = vsel %vm181_vm0, %v4041_v13, %v564_v24  ;;  %4042 = vst [vmem:[#allocation41_spill] sm:$0xff] %v2526_v16  ;;  %v4043_v34 = vpack.c.bf16 %v2198_v46, %v2198_v46 }
 0x185   :  { %v449_v27 = vmul.f32 %v2478_v56, %v420_v21  ;;  %v450_v54 = vmul.f32 %v2499_v55, %v423_v45  ;;  %692 = vmatpush1.bf16.msra.mxu0 %v593_v57  ;;  %4044 = vst [vmem:[#allocation42_spill] sm:$0xff] %v2533_v59  ;;  %v504_v14 = vpop.permute.xlu0 %503  ;;  %v451_v36 = vpack.c.bf16 %v447_v58, %v447_v58  ;;  %v571_v57 = vrot.slane %v495_v32, 4 }
 0x186   :  { %693 = vmatprep.subr.bf16.mxu0 %v613_v15  ;;  %v609_v22 = vsel %vm181_vm0, %v4043_v34, %v563_v29  ;;  %v629_v46 = vsel %vm181_vm0, %v452_v2, %v572_v31 }
 0x187   :  { %v453_v48 = vpack.c.bf16 %v449_v27, %v449_v27  ;;  %v454_v42 = vpack.c.bf16 %v450_v54, %v450_v54  ;;  %v502_v24 = vpop.permute.xlu1 %501  ;;  %v625_v27 = vsel %vm181_vm0, %v451_v36, %v571_v57 }
 0x188   :  { %v509_v3 = vsel %vm507_vm8, %v502_v24, %v504_v14  ;;  %v510_v12 = vsel %vm507_vm8, %v500_v52, %v502_v24  ;;  %v660_v24 = vld [vmem:[#allocation8 + $0x20] sm:$0xff] }
 0x189   :  { %v536_v29 = vmul.f32 %v2508_v61, %v509_v3  ;;  %694 = vmatpush1.bf16.msra.mxu0 %v609_v22  ;;  %v637_v43 = vsel %vm181_vm0, %v454_v42, %v574_v40  ;;  %v633_v11 = vsel %vm181_vm0, %v453_v48, %v573_v25  ;;  %v535_v19 = vmul.f32 %v2512_v17, %v510_v12  ;;  %v1835_v22 = vld [vmem:[%s3866_s6] sm:$0xff]   ;;  %v1836_v40 = vld [vmem:[%s3866_s6 + $0x8] sm:$0xff]   ;;  %v658_v42 = vld [vmem:[#allocation8 + $0x10] sm:$0xff] }
 0x18a   :  { %695 = vmatprep.subr.bf16.mxu0 %v629_v46  ;;  %748 = vmatprep.subr.bf16.mxu1 %v637_v43  ;;  %v4045_v25 = vmov 0   ;;  %v656_v48 = vld [vmem:[#allocation8] sm:$0xff]  ;;  %v662_v46 = vld [vmem:[#allocation8 + $0x30] sm:$0xff] }
 0x18b   :  { %v540_v58 = vpack.c.bf16 %v536_v29, %v536_v29  ;;  %749 = vmatpush1.bf16.msra.mxu1 %v633_v11  ;;  %v506_v21 = vpop.permute.xlu1 %505  ;;  %v539_v54 = vpack.c.bf16 %v535_v19, %v535_v19 }
 0x18c   :  { %v508_v45 = vsel %vm507_vm8, %v504_v14, %v506_v21  ;;  %v511_v2 = vsel %vm507_vm8, %v506_v21, %v500_v52 }
 0x18d   :  { %v538_v13 = vmul.f32 %v2526_v16, %v511_v2  ;;  %696 = vmatpush1.bf16.msra.mxu0 %v625_v27  ;;  %v537_v15 = vmul.f32 %v2533_v59, %v508_v45  ;;  %v641_v34 = vsel %vm181_vm0, %v539_v54, 0 }
 0x18e   :  { %1793 = vmatprep.subr.msk.bf16.mxu0 %vm181_vm0, %v540_v58 }
 0x18f   :  { %v542_v32 = vpack.c.bf16 %v538_v13, %v538_v13  ;;  %v541_v31 = vpack.c.bf16 %v537_v15, %v537_v15 }
 0x191   :  { %698 = vmatpush1.bf16.msra.mxu0 %v641_v34  ;;  %1796 = vmatprep.subr.msk.bf16.mxu1 %vm181_vm0, %v542_v32  ;;  %v647_v52 = vsel %vm181_vm0, %v541_v31, 0 }
 0x192   :  { %751 = vmatpush1.bf16.msra.mxu1 %v647_v52 }
 0x194   :  { %1794 = vmatmul.mubr.msk.bf16.vlgmr.msra.gmra.mrb[0].mxu0 %vm682_vm9, %v1835_v22 }
 0x195   :  { %1797 = vmatmul.mubr.msk.bf16.vlgmr.msra.gmra.mrb[0].mxu1 %vm682_vm9, %v1835_v22  ;;  %731 = vmatprep.mubr.bf16.mxu0 %v4045_v25 }
 0x196   :  { %784 = vmatprep.mubr.bf16.mxu1 %v4045_v25 }
 0x19c   :  { %1795 = vmatmul.mubr.msk.bf16.gmra.mrb[4].mxu0 %vm682_vm9, %v1836_v40 }
 0x19d   :  { %1798 = vmatmul.mubr.msk.bf16.gmra.mrb[4].mxu1 %vm682_vm9, %v1836_v40 }
 0x267   :  { %v723_v14 = vpop.f32.mrb[0].mxu0 }
 0x268   :  { %v724_v36 = vadd.f32 %v723_v14, %v656_v48  ;;  %v725_v3 = vpop.f32.mrb[1].mxu0  ;;  %v776_v12 = vpop.f32.mrb[0].mxu1 }
 0x269   :  { %v777_v29 = vadd.f32 %v776_v12, %v658_v42  ;;  %v727_v43 = vpop.f32.mrb[2].mxu0  ;;  %v778_v11 = vpop.f32.mrb[1].mxu1 }
 0x26a   :  { %v2563_v19 = vmax.f32 %v724_v36, 0.0  ;;  %v728_v57 = vadd.f32 %v727_v43, %v660_v24  ;;  %v729_v58 = vpop.f32.mrb[3].mxu0  ;;  %v780_v21 = vpop.f32.mrb[2].mxu1  ;;  %v657_v24 = vld [vmem:[#allocation8 + $0x8] sm:$0xff]  ;;  %v663_v43 = vld [vmem:[#allocation8 + $0x38] sm:$0xff] }
 0x26b   :  { %v2565_v45 = vmax.f32 %v777_v29, 0.0  ;;  %v781_v2 = vadd.f32 %v780_v21, %v662_v46  ;;  %v782_v27 = vpop.f32.mrb[3].mxu1  ;;  %v661_v36 = vld [vmem:[#allocation8 + $0x28] sm:$0xff]  ;;  %v726_v12 = vadd.f32 %v725_v3, %v657_v24  ;;  %v659_v46 = vld [vmem:[#allocation8 + $0x18] sm:$0xff] }
 0x26c   :  { %4046 = vst [vmem:[#allocation43_spill] sm:$0xff] %v2563_v19  ;;  %v2567_v54 = vmax.f32 %v728_v57, 0.0  ;;  %811 = vrot.lane.b32.xlu0 %v2563_v19, %s1985_s21  ;;  %v730_v29 = vadd.f32 %v729_v58, %v661_v36  ;;  %v779_v21 = vadd.f32 %v778_v11, %v659_v46  ;;  %v783_v31 = vadd.f32 %v782_v27, %v663_v43  ;;  %v664_v11 = vld [vmem:[#allocation8 + $0x40] sm:$0xff] }
 0x26d   :  { %4047 = vst [vmem:[#allocation44_spill] sm:$0xff] %v2565_v45  ;;  %v2571_v13 = vmax.f32 %v781_v2, 0.0  ;;  %v2653_v57 = vmax.f32 %v726_v12, 0.0  ;;  %v668_v36 = vld [vmem:[#allocation8 + $0x60] sm:$0xff]  ;;  %v666_v12 = vld [vmem:[#allocation8 + $0x50] sm:$0xff] }
 0x26e   :  { %4048 = vst [vmem:[#allocation45_spill] sm:$0xff] %v2567_v54  ;;  %813 = vrot.lane.b32.xlu1 %v2567_v54, %s1985_s21  ;;  %v2657_v2 = vmax.f32 %v730_v29, 0.0  ;;  %v2661_v3 = vmax.f32 %v779_v21, 0.0  ;;  %v2665_v58 = vmax.f32 %v783_v31, 0.0 }
 0x26f   :  { %4049 = vst [vmem:[#allocation46_spill] sm:$0xff] %v2571_v13  ;;  %v2577_v32 = vpop.f32.mrb[4].mxu0  ;;  %4050 = vst [vmem:[#allocation47_spill] sm:$0xff] %v2653_v57 }
 0x270   :  { %827 = vrot.lane.b32.xlu0 %v2565_v45, %s1985_s21  ;;  %v2583_v34 = vpop.f32.mrb[5].mxu0  ;;  %v2585_v22 = vpop.f32.mrb[4].mxu1  ;;  %4051 = vst [vmem:[#allocation48_spill] sm:$0xff] %v2657_v2  ;;  %4052 = vst [vmem:[#allocation49_spill] sm:$0xff] %v2661_v3  ;;  %v734_v31 = vadd.f32 %v2577_v32, %v664_v11  ;;  %v670_v32 = vld [vmem:[#allocation8 + $0x70] sm:$0xff] }
 0x271   :  { %v2587_v52 = vpop.f32.mrb[6].mxu0  ;;  %v2589_v40 = vpop.f32.mrb[5].mxu1  ;;  %4053 = vst [vmem:[#allocation50_spill] sm:$0xff] %v2665_v58  ;;  %v787_v21 = vadd.f32 %v2585_v22, %v666_v12  ;;  %v736_v55 = vadd.f32 %v2583_v34, %v665_v62 }
 0x272   :  { %829 = vrot.lane.b32.xlu1 %v2571_v13, %s1985_s21  ;;  %v2593_v48 = vpop.f32.mrb[7].mxu0  ;;  %v2595_v42 = vpop.f32.mrb[6].mxu1  ;;  %v2726_v29 = vmax.f32 %v734_v31, 0.0  ;;  %v738_v43 = vadd.f32 %v2587_v52, %v668_v36 }
 0x273   :  { %v2597_v14 = vpop.f32.mrb[7].mxu1  ;;  %v2740_v9 = vmax.f32 %v787_v21, 0.0  ;;  %v791_v31 = vadd.f32 %v2595_v42, %v670_v32 }
 0x274   :  { %883 = vrot.lane.b32.xlu0 %v2563_v19, %s1984_s1  ;;  %4054 = vst [vmem:[#allocation51_spill] sm:$0xff] %v2726_v29  ;;  %v2738_v10 = vmax.f32 %v738_v43, 0.0 }
 0x275   :  { %4056 = vst [vmem:[#allocation53_spill] sm:$0xff] %v2740_v9  ;;  %v2751_v36 = vmax.f32 %v791_v31, 0.0 }
 0x276   :  { %885 = vrot.lane.b32.xlu1 %v2567_v54, %s1984_s1  ;;  %4055 = vst [vmem:[#allocation52_spill] sm:$0xff] %v2738_v10 }
 0x277   :  { %4057 = vst [vmem:[#allocation54_spill] sm:$0xff] %v2751_v36 }
 0x278   :  { %899 = vrot.lane.b32.xlu0 %v2565_v45, %s1984_s1 }
 0x27a   :  { %901 = vrot.lane.b32.xlu1 %v2571_v13, %s1984_s1 }
 0x27c   :  { %955 = vrot.lane.b32.xlu0 %v2563_v19, %s1987_s28 }
 0x27e   :  { %957 = vrot.lane.b32.xlu1 %v2567_v54, %s1987_s28 }
 0x280   :  { %971 = vrot.lane.b32.xlu0 %v2565_v45, %s1987_s28 }
 0x282   :  { %973 = vrot.lane.b32.xlu1 %v2571_v13, %s1987_s28 }
 0x284   :  { %1027 = vrot.lane.b32.xlu0 %v2563_v19, %s1986_s27 }
 0x286   :  { %1029 = vrot.lane.b32.xlu1 %v2567_v54, %s1986_s27 }
 0x288   :  { %1043 = vrot.lane.b32.xlu0 %v2565_v45, %s1986_s27 }
 0x28a   :  { %1045 = vrot.lane.b32.xlu1 %v2571_v13, %s1986_s27 }
 0x28c   :  { %1107 = vrot.lane.b32.xlu0 %v2563_v19, %s1988_s29 }
 0x28e   :  { %1109 = vrot.lane.b32.xlu1 %v2567_v54, %s1988_s29 }
 0x290   :  { %1123 = vrot.lane.b32.xlu0 %v2565_v45, %s1988_s29 }
 0x292   :  { %1125 = vrot.lane.b32.xlu1 %v2571_v13, %s1988_s29 }
 0x294   :  { %1179 = vrot.lane.b32.xlu0 %v2563_v19, %s1990_s18 }
 0x296   :  { %1181 = vrot.lane.b32.xlu1 %v2567_v54, %s1990_s18 }
 0x298   :  { %1195 = vrot.lane.b32.xlu0 %v2565_v45, %s1990_s18 }
 0x29a   :  { %1197 = vrot.lane.b32.xlu1 %v2571_v13, %s1990_s18 }
 0x29c   :  { %1251 = vrot.lane.b32.xlu0 %v2563_v19, %s1989_s16 }
 0x29e   :  { %1253 = vrot.lane.b32.xlu1 %v2567_v54, %s1989_s16 }
 0x2a0   :  { %1267 = vrot.lane.b32.xlu0 %v2565_v45, %s1989_s16 }
 0x2a2   :  { %1269 = vrot.lane.b32.xlu1 %v2571_v13, %s1989_s16 }
 0x2a4   :  { %1323 = vrot.lane.b32.xlu0 %v2563_v19, %s1991_s20 }
 0x2a6   :  { %1325 = vrot.lane.b32.xlu1 %v2567_v54, %s1991_s20 }
 0x2a8   :  { %1339 = vrot.lane.b32.xlu0 %v2565_v45, %s1991_s20 }
 0x2aa   :  { %1341 = vrot.lane.b32.xlu1 %v2571_v13, %s1991_s20 }
 0x2ac   :  { %819 = vrot.lane.b32.xlu0 %v2653_v57, %s1985_s21 }
 0x2ae   :  { %821 = vrot.lane.b32.xlu1 %v2657_v2, %s1985_s21 }
 0x2b0   :  { %835 = vrot.lane.b32.xlu0 %v2661_v3, %s1985_s21 }
 0x2b2   :  { %837 = vrot.lane.b32.xlu1 %v2665_v58, %s1985_s21 }
 0x2b4   :  { %891 = vrot.lane.b32.xlu0 %v2653_v57, %s1984_s1 }
 0x2b6   :  { %893 = vrot.lane.b32.xlu1 %v2657_v2, %s1984_s1 }
 0x2b8   :  { %907 = vrot.lane.b32.xlu0 %v2661_v3, %s1984_s1 }
 0x2ba   :  { %909 = vrot.lane.b32.xlu1 %v2665_v58, %s1984_s1 }
 0x2bc   :  { %963 = vrot.lane.b32.xlu0 %v2653_v57, %s1987_s28 }
 0x2be   :  { %965 = vrot.lane.b32.xlu1 %v2657_v2, %s1987_s28 }
 0x2c0   :  { %979 = vrot.lane.b32.xlu0 %v2661_v3, %s1987_s28 }
 0x2c2   :  { %981 = vrot.lane.b32.xlu1 %v2665_v58, %s1987_s28 }
 0x2c4   :  { %1035 = vrot.lane.b32.xlu0 %v2653_v57, %s1986_s27 }
 0x2c6   :  { %1037 = vrot.lane.b32.xlu1 %v2657_v2, %s1986_s27 }
 0x2c8   :  { %1051 = vrot.lane.b32.xlu0 %v2661_v3, %s1986_s27 }
 0x2ca   :  { %1053 = vrot.lane.b32.xlu1 %v2665_v58, %s1986_s27 }
 0x2cc   :  { %1115 = vrot.lane.b32.xlu0 %v2653_v57, %s1988_s29 }
 0x2ce   :  { %1117 = vrot.lane.b32.xlu1 %v2657_v2, %s1988_s29 }
 0x2d0   :  { %1131 = vrot.lane.b32.xlu0 %v2661_v3, %s1988_s29 }
 0x2d2   :  { %1133 = vrot.lane.b32.xlu1 %v2665_v58, %s1988_s29 }
 0x2d4   :  { %1187 = vrot.lane.b32.xlu0 %v2653_v57, %s1990_s18 }
 0x2d6   :  { %1189 = vrot.lane.b32.xlu1 %v2657_v2, %s1990_s18 }
 0x2d8   :  { %1203 = vrot.lane.b32.xlu0 %v2661_v3, %s1990_s18 }
 0x2da   :  { %1205 = vrot.lane.b32.xlu1 %v2665_v58, %s1990_s18 }
 0x2dc   :  { %1259 = vrot.lane.b32.xlu0 %v2653_v57, %s1989_s16 }
 0x2de   :  { %1261 = vrot.lane.b32.xlu1 %v2657_v2, %s1989_s16  ;;  %v2715_v27 = vpop.permute.xlu0 %811 }
 0x2e0   :  { %v2718_v24 = vpop.permute.xlu1 %813  ;;  %1275 = vrot.lane.b32.xlu0 %v2661_v3, %s1989_s16 }
 0x2e2   :  { %1277 = vrot.lane.b32.xlu1 %v2665_v58, %s1989_s16  ;;  %v2724_v46 = vpop.permute.xlu0 %827 }
 0x2e4   :  { %v2730_v15 = vpop.permute.xlu1 %829  ;;  %1331 = vrot.lane.b32.xlu0 %v2653_v57, %s1991_s20 }
 0x2e6   :  { %1333 = vrot.lane.b32.xlu1 %v2657_v2, %s1991_s20  ;;  %v2736_v11 = vpop.permute.xlu0 %883 }
 0x2e8   :  { %v2743_v52 = vpop.permute.xlu1 %885  ;;  %815 = vrot.lane.b32.xlu0 %v2726_v29, %s1985_s21 }
 0x2ea   :  { %817 = vrot.lane.b32.xlu1 %v2738_v10, %s1985_s21  ;;  %v2749_v22 = vpop.permute.xlu0 %899 }
 0x2ec   :  { %v2753_v12 = vpop.permute.xlu1 %901  ;;  %831 = vrot.lane.b32.xlu0 %v2740_v9, %s1985_s21 }
 0x2ee   :  { %833 = vrot.lane.b32.xlu1 %v2751_v36, %s1985_s21  ;;  %v2759_v42 = vpop.permute.xlu0 %955 }
 0x2f0   :  { %v2761_v43 = vpop.permute.xlu1 %957  ;;  %887 = vrot.lane.b32.xlu0 %v2726_v29, %s1984_s1 }
 0x2f2   :  { %889 = vrot.lane.b32.xlu1 %v2738_v10, %s1984_s1  ;;  %v2767_v21 = vpop.permute.xlu0 %971 }
 0x2f4   :  { %v2769_v32 = vpop.permute.xlu1 %973  ;;  %903 = vrot.lane.b32.xlu0 %v2740_v9, %s1984_s1 }
 0x2f6   :  { %905 = vrot.lane.b32.xlu1 %v2751_v36, %s1984_s1  ;;  %v2775_v31 = vpop.permute.xlu0 %1027 }
 0x2f8   :  { %v2777_v8 = vpop.permute.xlu1 %1029  ;;  %959 = vrot.lane.b32.xlu0 %v2726_v29, %s1987_s28 }
 0x2fa   :  { %961 = vrot.lane.b32.xlu1 %v2738_v10, %s1987_s28  ;;  %v2783_v7 = vpop.permute.xlu0 %1043 }
 0x2fc   :  { %v2785_v25 = vpop.permute.xlu1 %1045  ;;  %975 = vrot.lane.b32.xlu0 %v2740_v9, %s1987_s28 }
 0x2fe   :  { %977 = vrot.lane.b32.xlu1 %v2751_v36, %s1987_s28  ;;  %v2791_v59 = vpop.permute.xlu0 %1107 }
 0x300   :  { %v2793_v16 = vpop.permute.xlu1 %1109  ;;  %1031 = vrot.lane.b32.xlu0 %v2726_v29, %s1986_s27 }
 0x302   :  { %1033 = vrot.lane.b32.xlu1 %v2738_v10, %s1986_s27  ;;  %v2799_v45 = vpop.permute.xlu0 %1123 }
 0x304   :  { %v2801_v13 = vpop.permute.xlu1 %1125  ;;  %1047 = vrot.lane.b32.xlu0 %v2740_v9, %s1986_s27 }
 0x306   :  { %1049 = vrot.lane.b32.xlu1 %v2751_v36, %s1986_s27  ;;  %v2807_v19 = vpop.permute.xlu0 %1179 }
 0x308   :  { %v2809_v54 = vpop.permute.xlu1 %1181  ;;  %1111 = vrot.lane.b32.xlu0 %v2726_v29, %s1988_s29 }
 0x30a   :  { %1113 = vrot.lane.b32.xlu1 %v2738_v10, %s1988_s29  ;;  %v2815_v2 = vpop.permute.xlu0 %1195 }
 0x30c   :  { %v2817_v57 = vpop.permute.xlu1 %1197  ;;  %1127 = vrot.lane.b32.xlu0 %v2740_v9, %s1988_s29 }
 0x30e   :  { %1129 = vrot.lane.b32.xlu1 %v2751_v36, %s1988_s29  ;;  %v2823_v61 = vpop.permute.xlu0 %1251 }
 0x30f   :  { %4058 = vst [vmem:[#allocation55_spill] sm:$0xff] %v2823_v61  ;;  %v669_v61 = vld [vmem:[#allocation8 + $0x68] sm:$0xff] }
 0x310   :  { %v2825_v17 = vpop.permute.xlu1 %1253  ;;  %1183 = vrot.lane.b32.xlu0 %v2726_v29, %s1990_s18  ;;  %v740_v56 = vadd.f32 %v2593_v48, %v669_v61 }
 0x311   :  { %4059 = vst [vmem:[#allocation56_spill] sm:$0xff] %v2825_v17 }
 0x312   :  { %1185 = vrot.lane.b32.xlu1 %v2738_v10, %s1990_s18  ;;  %v2831_v49 = vpop.permute.xlu0 %1267 }
 0x313   :  { %4060 = vst [vmem:[#allocation57_spill] sm:$0xff] %v2831_v49  ;;  %v667_v49 = vld [vmem:[#allocation8 + $0x58] sm:$0xff] }
 0x314   :  { %v2833_v0 = vpop.permute.xlu1 %1269  ;;  %1199 = vrot.lane.b32.xlu0 %v2740_v9, %s1990_s18 }
 0x315   :  { %4061 = vst [vmem:[#allocation58_spill] sm:$0xff] %v2833_v0 }
 0x316   :  { %1201 = vrot.lane.b32.xlu1 %v2751_v36, %s1990_s18  ;;  %v2839_v1 = vpop.permute.xlu0 %1323 }
 0x317   :  { %4062 = vst [vmem:[#allocation59_spill] sm:$0xff] %v2839_v1  ;;  %v2855_v1 = vmax.f32 %v736_v55, 0.0 }
 0x318   :  { %v2841_v17 = vpop.permute.xlu1 %1325  ;;  %1255 = vrot.lane.b32.xlu0 %v2726_v29, %s1989_s16  ;;  %v789_v29 = vadd.f32 %v2589_v40, %v667_v49 }
 0x319   :  { %4063 = vst [vmem:[#allocation60_spill] sm:$0xff] %v2841_v17  ;;  %v671_v17 = vld [vmem:[#allocation8 + $0x78] sm:$0xff]  ;;  %4066 = vst [vmem:[#allocation63_spill] sm:$0xff] %v2855_v1 }
 0x31a   :  { %1257 = vrot.lane.b32.xlu1 %v2738_v10, %s1989_s16  ;;  %v2848_v0 = vpop.permute.xlu0 %1339  ;;  %v793_v61 = vadd.f32 %v2597_v14, %v671_v17  ;;  %v2871_v55 = vmax.f32 %v789_v29, 0.0 }
 0x31b   :  { %4064 = vst [vmem:[#allocation61_spill] sm:$0xff] %v2848_v0  ;;  %v2863_v0 = vmax.f32 %v740_v56, 0.0 }
 0x31c   :  { %v2851_v41 = vpop.permute.xlu1 %1341  ;;  %1271 = vrot.lane.b32.xlu0 %v2740_v9, %s1989_s16  ;;  %4068 = vst [vmem:[#allocation65_spill] sm:$0xff] %v2871_v55 }
 0x31d   :  { %4065 = vst [vmem:[#allocation62_spill] sm:$0xff] %v2851_v41  ;;  %4067 = vst [vmem:[#allocation64_spill] sm:$0xff] %v2863_v0 }
 0x31e   :  { %1273 = vrot.lane.b32.xlu1 %v2751_v36, %s1989_s16  ;;  %v820_v62 = vpop.permute.xlu0 %819  ;;  %v2886_v36 = vmax.f32 %v793_v61, 0.0 }
 0x31f   :  { %v851_v34 = vsel %vm196_vm2, %v2715_v27, %v820_v62 }
 0x320   :  { %v822_v48 = vpop.permute.xlu1 %821  ;;  %823 = vrot.lane.b32.xlu0 %v2855_v1, %s1985_s21  ;;  %v860_v40 = vmul.f32 %v851_v34, %v2350_v4  ;;  %4069 = vst [vmem:[#allocation66_spill] sm:$0xff] %v2886_v36  ;;  %v847_v34 = vsel %vm196_vm2, %v820_v62, %v2724_v46 }
 0x321   :  { %v852_v49 = vsel %vm196_vm2, %v2718_v24, %v822_v48  ;;  %v848_v9 = vsel %vm196_vm2, %v822_v48, %v2730_v15 }
 0x322   :  { %v864_v56 = vmul.f32 %v852_v49, %v2350_v4  ;;  %825 = vrot.lane.b32.xlu1 %v2863_v0, %s1985_s21  ;;  %v836_v17 = vpop.permute.xlu0 %835  ;;  %v865_v4 = vmul.f32 %v848_v9, %v2288_v60 }
 0x323   :  { %v843_v14 = vsel %vm196_vm2, %v2724_v46, %v836_v17  ;;  %v855_v29 = vsel %vm196_vm2, %v836_v17, %v2715_v27 }
 0x324   :  { %v838_v48 = vpop.permute.xlu1 %837  ;;  %839 = vrot.lane.b32.xlu0 %v2871_v55, %s1985_s21  ;;  %v876_v49 = vpack.c.bf16 %v864_v56, %v860_v40  ;;  %v859_v41 = vmul.f32 %v855_v29, %v2353_v5  ;;  %v862_v61 = vmul.f32 %v843_v14, %v2293_v63  ;;  %v861_v40 = vmul.f32 %v847_v34, %v2288_v60 }
 0x325   :  { %v844_v37 = vsel %vm196_vm2, %v2730_v15, %v838_v48  ;;  %v856_v27 = vsel %vm196_vm2, %v838_v48, %v2718_v24 }
 0x326   :  { %v863_v46 = vmul.f32 %v856_v27, %v2353_v5  ;;  %v866_v62 = vmul.f32 %v844_v37, %v2293_v63  ;;  %841 = vrot.lane.b32.xlu1 %v2886_v36, %s1985_s21  ;;  %1417 = vmatprep.subr.bf16.mxu0 %v876_v49  ;;  %v892_v9 = vpop.permute.xlu0 %891  ;;  %v877_v14 = vpack.c.bf16 %v865_v4, %v861_v40 }
 0x327   :  { %v919_v15 = vsel %vm239_vm1, %v892_v9, %v2749_v22  ;;  %v923_v24 = vsel %vm239_vm1, %v2736_v11, %v892_v9 }
 0x328   :  { %v875_v56 = vpack.c.bf16 %v863_v46, %v859_v41  ;;  %v894_v17 = vpop.permute.xlu1 %893  ;;  %895 = vrot.lane.b32.xlu0 %v2855_v1, %s1984_s1  ;;  %v878_v37 = vpack.c.bf16 %v866_v62, %v862_v61  ;;  %v2922_v41 = vmul.f32 %v919_v15, %v2274_v53  ;;  %v2933_v27 = vmul.f32 %v923_v24, %v2417_v6 }
 0x329   :  { %v920_v29 = vsel %vm239_vm1, %v894_v17, %v2753_v12  ;;  %v924_v34 = vsel %vm239_vm1, %v2743_v52, %v894_v17 }
 0x32a   :  { %v2925_v48 = vmul.f32 %v924_v34, %v2417_v6  ;;  %v2928_v49 = vmul.f32 %v920_v29, %v2274_v53  ;;  %897 = vrot.lane.b32.xlu1 %v2863_v0, %s1984_s1  ;;  %1418 = vmatpush1.bf16.msra.mxu0 %v875_v56  ;;  %v908_v4 = vpop.permute.xlu0 %907 }
 0x32b   :  { %1499 = vmatprep.subr.bf16.mxu1 %v878_v37  ;;  %v915_v61 = vsel %vm239_vm1, %v2749_v22, %v908_v4  ;;  %v927_v46 = vsel %vm239_vm1, %v908_v4, %v2736_v11 }
 0x32c   :  { %1500 = vmatpush1.bf16.msra.mxu1 %v877_v14  ;;  %v910_v9 = vpop.permute.xlu1 %909  ;;  %911 = vrot.lane.b32.xlu0 %v2871_v55, %s1984_s1  ;;  %v2954_v11 = vmul.f32 %v927_v46, %v2413_v18  ;;  %v2957_v56 = vmul.f32 %v915_v61, %v2268_v51 }
 0x32d   :  { %v916_v40 = vsel %vm239_vm1, %v2753_v12, %v910_v9  ;;  %v928_v22 = vsel %vm239_vm1, %v910_v9, %v2743_v52 }
 0x32e   :  { %v2960_v24 = vmul.f32 %v928_v22, %v2413_v18  ;;  %v2963_v17 = vmul.f32 %v916_v40, %v2268_v51  ;;  %913 = vrot.lane.b32.xlu1 %v2886_v36, %s1984_s1  ;;  %v964_v12 = vpop.permute.xlu0 %963 }
 0x32f   :  { %v991_v52 = vsel %vm283_vm4, %v964_v12, %v2767_v21  ;;  %v995_v37 = vsel %vm283_vm4, %v2759_v42, %v964_v12 }
 0x330   :  { %v966_v29 = vpop.permute.xlu1 %965  ;;  %967 = vrot.lane.b32.xlu0 %v2855_v1, %s1987_s28  ;;  %v2986_v46 = vmul.f32 %v995_v37, %v2376_v33  ;;  %v2989_v9 = vmul.f32 %v991_v52, %v2332_v35 }
 0x331   :  { %v992_v4 = vsel %vm283_vm4, %v966_v29, %v2769_v32  ;;  %v996_v61 = vsel %vm283_vm4, %v2761_v43, %v966_v29 }
 0x332   :  { %v2992_v40 = vmul.f32 %v996_v61, %v2376_v33  ;;  %v2995_v22 = vmul.f32 %v992_v4, %v2332_v35  ;;  %969 = vrot.lane.b32.xlu1 %v2863_v0, %s1987_s28  ;;  %v980_v12 = vpop.permute.xlu0 %979 }
 0x333   :  { %v987_v29 = vsel %vm283_vm4, %v2767_v21, %v980_v12  ;;  %v999_v37 = vsel %vm283_vm4, %v980_v12, %v2759_v42 }
 0x334   :  { %v982_v61 = vpop.permute.xlu1 %981  ;;  %983 = vrot.lane.b32.xlu0 %v2871_v55, %s1987_s28  ;;  %v3018_v42 = vmul.f32 %v999_v37, %v2382_v39  ;;  %v3021_v12 = vmul.f32 %v987_v29, %v2337_v38 }
 0x335   :  { %v988_v62 = vsel %vm283_vm4, %v2769_v32, %v982_v61  ;;  %v1000_v21 = vsel %vm283_vm4, %v982_v61, %v2761_v43 }
 0x336   :  { %v3024_v52 = vmul.f32 %v1000_v21, %v2382_v39  ;;  %v3027_v14 = vmul.f32 %v988_v62, %v2337_v38  ;;  %985 = vrot.lane.b32.xlu1 %v2886_v36, %s1987_s28  ;;  %v1036_v32 = vpop.permute.xlu0 %1035 }
 0x337   :  { %v1063_v43 = vsel %vm327_vm3, %v1036_v32, %v2783_v7  ;;  %v1067_v37 = vsel %vm327_vm3, %v2775_v31, %v1036_v32 }
 0x338   :  { %v1038_v61 = vpop.permute.xlu1 %1037  ;;  %1039 = vrot.lane.b32.xlu0 %v2855_v1, %s1986_s27  ;;  %v3050_v32 = vmul.f32 %v1067_v37, %v2365_v23  ;;  %v3053_v29 = vmul.f32 %v1063_v43, %v2318_v28 }
 0x339   :  { %v1064_v21 = vsel %vm327_vm3, %v1038_v61, %v2785_v25  ;;  %v1068_v4 = vsel %vm327_vm3, %v2777_v8, %v1038_v61 }
 0x33a   :  { %4070 = vst [vmem:[#allocation67_spill] sm:$0xff] %v3053_v29  ;;  %v3056_v34 = vmul.f32 %v1068_v4, %v2365_v23  ;;  %v3059_v15 = vmul.f32 %v1064_v21, %v2318_v28  ;;  %1041 = vrot.lane.b32.xlu1 %v2863_v0, %s1986_s27  ;;  %v1052_v62 = vpop.permute.xlu0 %1051 }
 0x33b   :  { %v1059_v61 = vsel %vm327_vm3, %v2783_v7, %v1052_v62  ;;  %v1071_v37 = vsel %vm327_vm3, %v1052_v62, %v2775_v31 }
 0x33c   :  { %4071 = vst [vmem:[#allocation68_spill] sm:$0xff] %v3059_v15  ;;  %v1054_v4 = vpop.permute.xlu1 %1053  ;;  %1055 = vrot.lane.b32.xlu0 %v2871_v55, %s1986_s27  ;;  %v3082_v31 = vmul.f32 %v1071_v37, %v2373_v30  ;;  %v3085_v62 = vmul.f32 %v1059_v61, %v2313_v26 }
 0x33d   :  { %v1060_v28 = vsel %vm327_vm3, %v2785_v25, %v1054_v4  ;;  %v1072_v7 = vsel %vm327_vm3, %v1054_v4, %v2777_v8 }
 0x33e   :  { %4072 = vst [vmem:[#allocation69_spill] sm:$0xff] %v3082_v31  ;;  %4073 = vst [vmem:[#allocation70_spill] sm:$0xff] %v3085_v62  ;;  %v3088_v43 = vmul.f32 %v1072_v7, %v2373_v30  ;;  %v3091_v29 = vmul.f32 %v1060_v28, %v2313_v26  ;;  %1057 = vrot.lane.b32.xlu1 %v2886_v36, %s1986_s27  ;;  %v1116_v25 = vpop.permute.xlu0 %1115 }
 0x33f   :  { %v1143_v8 = vsel %vm375_vm5, %v1116_v25, %v2799_v45  ;;  %v1147_v37 = vsel %vm375_vm5, %v2791_v59, %v1116_v25 }
 0x340   :  { %4074 = vst [vmem:[#allocation71_spill] sm:$0xff] %v3088_v43  ;;  %v1118_v4 = vpop.permute.xlu1 %1117  ;;  %1347 = vrot.lane.b32.xlu0 %v2661_v3, %s1991_s20  ;;  %v3114_v25 = vmul.f32 %v1147_v37, %v2385_v44  ;;  %v3117_v61 = vmul.f32 %v1143_v8, %v2396_v50 }
 0x341   :  { %v1144_v7 = vsel %vm375_vm5, %v1118_v4, %v2801_v13  ;;  %v1148_v21 = vsel %vm375_vm5, %v2793_v16, %v1118_v4 }
 0x342   :  { %4075 = vst [vmem:[#allocation72_spill] sm:$0xff] %v3114_v25  ;;  %4076 = vst [vmem:[#allocation73_spill] sm:$0xff] %v3117_v61  ;;  %v3120_v15 = vmul.f32 %v1148_v21, %v2385_v44  ;;  %v3123_v3 = vmul.f32 %v1144_v7, %v2396_v50  ;;  %1349 = vrot.lane.b32.xlu1 %v2665_v58, %s1991_s20  ;;  %v1132_v28 = vpop.permute.xlu0 %1131  ;;  %v1690_v61 = vld [vmem:[%s3872_s12] sm:$0xf] }
 0x343   :  { %v1139_v4 = vsel %vm375_vm5, %v2799_v45, %v1132_v28  ;;  %v1151_v37 = vsel %vm375_vm5, %v1132_v28, %v2791_v59  ;;  %v4080_v28 = vld [vmem:[#allocation27_spill] sm:$0xff] }
 0x344   :  { %4077 = vst [vmem:[#allocation74_spill] sm:$0xff] %v3120_v15  ;;  %4078 = vst [vmem:[#allocation75_spill] sm:$0xff] %v3123_v3  ;;  %v1134_v21 = vpop.permute.xlu1 %1133  ;;  %1119 = vrot.lane.b32.xlu0 %v2855_v1, %s1988_s29  ;;  %v3146_v59 = vmul.f32 %v1139_v4, %v2357_v20  ;;  %v3149_v8 = vmul.f32 %v1151_v37, %v4080_v28 }
 0x345   :  { %v1140_v44 = vsel %vm375_vm5, %v2801_v13, %v1134_v21  ;;  %v1152_v45 = vsel %vm375_vm5, %v1134_v21, %v2793_v16 }
 0x346   :  { %4079 = vst [vmem:[#allocation76_spill] sm:$0xff] %v3146_v59  ;;  %4081 = vst [vmem:[#allocation77_spill] sm:$0xff] %v3149_v8  ;;  %v3152_v25 = vmul.f32 %v1140_v44, %v2357_v20  ;;  %v3155_v15 = vmul.f32 %v1152_v45, %v4080_v28  ;;  %1329 = vrot.lane.b32.xlu1 %v2738_v10, %s1991_s20  ;;  %v1188_v13 = vpop.permute.xlu0 %1187  ;;  %v4084_v28 = vld [vmem:[#allocation35_spill] sm:$0xff]  ;;  %v4086_v20 = vld [vmem:[#allocation36_spill] sm:$0xff] }
 0x347   :  { %v1215_v16 = vsel %vm419_vm7, %v1188_v13, %v2815_v2  ;;  %v1219_v4 = vsel %vm419_vm7, %v2807_v19, %v1188_v13  ;;  %v4100_v8 = vld [vmem:[#allocation31_spill] sm:$0xff] }
 0x348   :  { %4082 = vst [vmem:[#allocation78_spill] sm:$0xff] %v3152_v25  ;;  %4083 = vst [vmem:[#allocation79_spill] sm:$0xff] %v3155_v15  ;;  %v1190_v44 = vpop.permute.xlu1 %1189  ;;  %1135 = vrot.lane.b32.xlu0 %v2871_v55, %s1988_s29  ;;  %v3178_v13 = vmul.f32 %v1219_v4, %v4084_v28  ;;  %v3181_v37 = vmul.f32 %v1215_v16, %v4086_v20  ;;  %v4102_v15 = vld [vmem:[#allocation32_spill] sm:$0xff] }
 0x349   :  { %v1216_v45 = vsel %vm419_vm7, %v1190_v44, %v2817_v57  ;;  %v1220_v7 = vsel %vm419_vm7, %v2809_v54, %v1190_v44 }
 0x34a   :  { %4085 = vst [vmem:[#allocation80_spill] sm:$0xff] %v3178_v13  ;;  %4087 = vst [vmem:[#allocation81_spill] sm:$0xff] %v3181_v37  ;;  %v3184_v59 = vmul.f32 %v1220_v7, %v4084_v28  ;;  %v3187_v25 = vmul.f32 %v1216_v45, %v4086_v20  ;;  %1121 = vrot.lane.b32.xlu1 %v2863_v0, %s1988_s29  ;;  %v1204_v21 = vpop.permute.xlu0 %1203  ;;  %v4090_v20 = vld [vmem:[#allocation37_spill] sm:$0xff]  ;;  %v4099_v37 = vld [vmem:[#allocation56_spill] sm:$0xff] }
 0x34b   :  { %v1211_v44 = vsel %vm419_vm7, %v2815_v2, %v1204_v21  ;;  %v1223_v4 = vsel %vm419_vm7, %v1204_v21, %v2807_v19  ;;  %v4092_v21 = vld [vmem:[#allocation38_spill] sm:$0xff]  ;;  %v4096_v45 = vld [vmem:[#allocation57_spill] sm:$0xff] }
 0x34c   :  { %4088 = vst [vmem:[#allocation82_spill] sm:$0xff] %v3184_v59  ;;  %4089 = vst [vmem:[#allocation83_spill] sm:$0xff] %v3187_v25  ;;  %v1206_v7 = vpop.permute.xlu1 %1205  ;;  %1191 = vrot.lane.b32.xlu0 %v2855_v1, %s1990_s18  ;;  %v3210_v19 = vmul.f32 %v1211_v44, %v4090_v20  ;;  %v3213_v16 = vmul.f32 %v1223_v4, %v4092_v21 }
 0x34d   :  { %v1212_v28 = vsel %vm419_vm7, %v2817_v57, %v1206_v7  ;;  %v1224_v2 = vsel %vm419_vm7, %v1206_v7, %v2809_v54  ;;  %v4097_v7 = vld [vmem:[#allocation55_spill] sm:$0xff] }
 0x34e   :  { %4091 = vst [vmem:[#allocation84_spill] sm:$0xff] %v3210_v19  ;;  %4093 = vst [vmem:[#allocation85_spill] sm:$0xff] %v3213_v16  ;;  %v3216_v13 = vmul.f32 %v1212_v28, %v4090_v20  ;;  %v3219_v59 = vmul.f32 %v1224_v2, %v4092_v21  ;;  %1137 = vrot.lane.b32.xlu1 %v2886_v36, %s1988_s29  ;;  %v1260_v57 = vpop.permute.xlu0 %1259  ;;  %v4098_v21 = vld [vmem:[#allocation58_spill] sm:$0xff] }
 0x34f   :  { %v1287_v54 = vsel %vm463_vm6, %v1260_v57, %v4096_v45  ;;  %v1291_v44 = vsel %vm463_vm6, %v4097_v7, %v1260_v57 }
 0x350   :  { %4094 = vst [vmem:[#allocation86_spill] sm:$0xff] %v3216_v13  ;;  %4095 = vst [vmem:[#allocation87_spill] sm:$0xff] %v3219_v59  ;;  %v1262_v28 = vpop.permute.xlu1 %1261  ;;  %1207 = vrot.lane.b32.xlu0 %v2871_v55, %s1990_s18  ;;  %v3242_v57 = vmul.f32 %v1291_v44, %v4100_v8  ;;  %v3245_v4 = vmul.f32 %v1287_v54, %v4102_v15 }
 0x351   :  { %v1288_v20 = vsel %vm463_vm6, %v1262_v28, %v4098_v21  ;;  %v1292_v25 = vsel %vm463_vm6, %v4099_v37, %v1262_v28 }
 0x352   :  { %4101 = vst [vmem:[#allocation57_spill] sm:$0xff] %v3242_v57  ;;  %4103 = vst [vmem:[#allocation55_spill] sm:$0xff] %v3245_v4  ;;  %v3248_v19 = vmul.f32 %v1292_v25, %v4100_v8  ;;  %v3251_v13 = vmul.f32 %v1288_v20, %v4102_v15  ;;  %1193 = vrot.lane.b32.xlu1 %v2863_v0, %s1990_s18  ;;  %v1276_v2 = vpop.permute.xlu0 %1275  ;;  %v4106_v15 = vld [vmem:[#allocation33_spill] sm:$0xff]  ;;  %v4115_v4 = vld [vmem:[#allocation62_spill] sm:$0xff] }
 0x353   :  { %v1283_v28 = vsel %vm463_vm6, %v4096_v45, %v1276_v2  ;;  %v1295_v44 = vsel %vm463_vm6, %v1276_v2, %v4097_v7  ;;  %v4108_v2 = vld [vmem:[#allocation34_spill] sm:$0xff]  ;;  %v4119_v20 = vld [vmem:[#allocation39_spill] sm:$0xff] }
 0x354   :  { %4104 = vst [vmem:[#allocation58_spill] sm:$0xff] %v3248_v19  ;;  %4105 = vst [vmem:[#allocation56_spill] sm:$0xff] %v3251_v13  ;;  %v1278_v25 = vpop.permute.xlu1 %1277  ;;  %1263 = vrot.lane.b32.xlu0 %v2855_v1, %s1989_s16  ;;  %v3274_v7 = vmul.f32 %v1283_v28, %v4106_v15  ;;  %v3277_v54 = vmul.f32 %v1295_v44, %v4108_v2  ;;  %v4113_v28 = vld [vmem:[#allocation61_spill] sm:$0xff]  ;;  %v4116_v13 = vld [vmem:[#allocation60_spill] sm:$0xff] }
 0x355   :  { %v1284_v8 = vsel %vm463_vm6, %v4098_v21, %v1278_v25  ;;  %v1296_v45 = vsel %vm463_vm6, %v1278_v25, %v4099_v37  ;;  %v3290_v37 = vld [vmem:[%s3868_s8] sm:$0xff]  ;;  %v4114_v25 = vld [vmem:[#allocation59_spill] sm:$0xff] }
 0x356   :  { %4107 = vst [vmem:[#allocation88_spill] sm:$0xff] %v3274_v7  ;;  %4109 = vst [vmem:[#allocation89_spill] sm:$0xff] %v3277_v54  ;;  %v3280_v57 = vmul.f32 %v1284_v8, %v4106_v15  ;;  %v3283_v19 = vmul.f32 %v1296_v45, %v4108_v2  ;;  %1209 = vrot.lane.b32.xlu1 %v2886_v36, %s1990_s18  ;;  %v1332_v21 = vpop.permute.xlu0 %1331  ;;  %v1800_v45 = vcombine.high %v3290_v37, %v3290_v37 }
 0x357   :  { %4112 = vst [vmem:[#allocation92_spill] sm:$0xff] %v3290_v37  ;;  %v1359_v44 = vsel %vm507_vm8, %v1332_v21, %v4113_v28  ;;  %v1363_v8 = vsel %vm507_vm8, %v4114_v25, %v1332_v21  ;;  %v4117_v37 = vld [vmem:[#allocation40_spill] sm:$0xff] }
 0x358   :  { %4110 = vst [vmem:[#allocation90_spill] sm:$0xff] %v3280_v57  ;;  %4111 = vst [vmem:[#allocation91_spill] sm:$0xff] %v3283_v19  ;;  %v1334_v2 = vpop.permute.xlu1 %1333  ;;  %1279 = vrot.lane.b32.xlu0 %v2871_v55, %s1989_s16  ;;  %1449 = vmatprep.mubr.bf16.mxu0 %v1800_v45  ;;  %v3313_v25 = vmul.f32 %v1363_v8, %v4117_v37  ;;  %v3316_v7 = vmul.f32 %v1359_v44, %v4119_v20  ;;  %v4123_v8 = vld [vmem:[#allocation51_spill] sm:$0xff] }
 0x359   :  { %v1360_v28 = vsel %vm507_vm8, %v1334_v2, %v4115_v4  ;;  %v1364_v21 = vsel %vm507_vm8, %v4116_v13, %v1334_v2  ;;  %1531 = vmatprep.mubr.bf16.mxu1 %v1800_v45  ;;  %v1704_v4 = vld [vmem:[%s3873_s13] sm:$0xf] }
 0x35a   :  { %4118 = vst [vmem:[#allocation93_spill] sm:$0xff] %v3313_v25  ;;  %4120 = vst [vmem:[#allocation94_spill] sm:$0xff] %v3316_v7  ;;  %v3319_v57 = vmul.f32 %v1364_v21, %v4117_v37  ;;  %v3322_v15 = vmul.f32 %v1360_v28, %v4119_v20  ;;  %1265 = vrot.lane.b32.xlu1 %v2863_v0, %s1989_s16  ;;  %v816_v54 = vpop.permute.xlu0 %815  ;;  %v4124_v20 = vld [vmem:[#allocation54_spill] sm:$0xff]  ;;  %v4125_v25 = vld [vmem:[#allocation53_spill] sm:$0xff] }
 0x35b   :  { %v1397_v7 = vld [vmem:[%s3869_s9] sm:$0xff] }
 0x35c   :  { %4121 = vst [vmem:[#allocation95_spill] sm:$0xff] %v3319_v57  ;;  %4122 = vst [vmem:[#allocation96_spill] sm:$0xff] %v3322_v15  ;;  %v818_v45 = vpop.permute.xlu1 %817  ;;  %1327 = vrot.lane.b32.xlu0 %v4123_v8, %s1991_s20 }
 0x35e   :  { %1281 = vrot.lane.b32.xlu1 %v2886_v36, %s1989_s16  ;;  %v832_v21 = vpop.permute.xlu0 %831 }
 0x360   :  { %v834_v28 = vpop.permute.xlu1 %833  ;;  %1335 = vrot.lane.b32.xlu0 %v2855_v1, %s1991_s20 }
 0x362   :  { %1345 = vrot.lane.b32.xlu1 %v4124_v20, %s1991_s20  ;;  %v3338_v37 = vpop.permute.xlu0 %887 }
 0x364   :  { %v3340_v2 = vpop.permute.xlu1 %889  ;;  %1343 = vrot.lane.b32.xlu0 %v4125_v25, %s1991_s20 }
 0x366   :  { %1337 = vrot.lane.b32.xlu1 %v2863_v0, %s1991_s20  ;;  %v3346_v44 = vpop.permute.xlu0 %903 }
 0x368   :  { %v3348_v57 = vpop.permute.xlu1 %905  ;;  %1351 = vrot.lane.b32.xlu0 %v2871_v55, %s1991_s20 }
 0x36a   :  { %1353 = vrot.lane.b32.xlu1 %v2886_v36, %s1991_s20  ;;  %v3357_v15 = vpop.permute.xlu0 %959 }
 0x36c   :  { %v3359_v19 = vpop.permute.xlu1 %961  ;;  %1400 = vperm.xlu0 %1833, %v1397_v7   ;;  %v1734_v7 = vld [vmem:[%s3874_s14] sm:$0xf] }
 0x36e   :  { %v3364_v13 = vpop.permute.xlu0 %975  ;;  %1693 = vperm.xlu1 %1834, %v1690_v61  }
 0x370   :  { %v3366_v16 = vpop.permute.xlu1 %977  ;;  %1707 = vperm.xlu0 %1833, %v1704_v4  }
 0x372   :  { %v3368_v59 = vpop.permute.xlu0 %1031  ;;  %1737 = vperm.xlu1 %1834, %v1734_v7  }
 0x374   :  { %v3373_v3 = vpop.permute.xlu1 %1033 }
 0x376   :  { %v3378_v50 = vpop.permute.xlu0 %1047 }
 0x378   :  { %v3380_v20 = vpop.permute.xlu1 %1049 }
 0x37a   :  { %v3382_v25 = vpop.permute.xlu0 %1111 }
 0x37b   :  { %4126 = vst [vmem:[#allocation97_spill] sm:$0xff] %v3382_v25 }
 0x37c   :  { %v3384_v4 = vpop.permute.xlu1 %1113 }
 0x37d   :  { %4127 = vst [vmem:[#allocation98_spill] sm:$0xff] %v3384_v4 }
 0x37e   :  { %v3386_v10 = vpop.permute.xlu0 %1127 }
 0x37f   :  { %4128 = vst [vmem:[#allocation99_spill] sm:$0xff] %v3386_v10 }
 0x380   :  { %v3388_v8 = vpop.permute.xlu1 %1129 }
 0x381   :  { %4129 = vst [vmem:[#allocation100_spill] sm:$0xff] %v3388_v8 }
 0x382   :  { %v3390_v61 = vpop.permute.xlu0 %1183 }
 0x383   :  { %4130 = vst [vmem:[#allocation101_spill] sm:$0xff] %v3390_v61 }
 0x384   :  { %v3392_v36 = vpop.permute.xlu1 %1185 }
 0x385   :  { %4131 = vst [vmem:[#allocation102_spill] sm:$0xff] %v3392_v36  ;;  %v4138_v36 = vld [vmem:[#allocation25_spill] sm:$0xff] }
 0x386   :  { %v3394_v55 = vpop.permute.xlu0 %1199 }
 0x387   :  { %4132 = vst [vmem:[#allocation103_spill] sm:$0xff] %v3394_v55 }
 0x388   :  { %v3396_v0 = vpop.permute.xlu1 %1201 }
 0x389   :  { %4133 = vst [vmem:[#allocation104_spill] sm:$0xff] %v3396_v0 }
 0x38a   :  { %v3398_v1 = vpop.permute.xlu0 %1255 }
 0x38b   :  { %4134 = vst [vmem:[#allocation105_spill] sm:$0xff] %v3398_v1 }
 0x38c   :  { %v3400_v7 = vpop.permute.xlu1 %1257 }
 0x38d   :  { %4135 = vst [vmem:[#allocation106_spill] sm:$0xff] %v3400_v7 }
 0x38e   :  { %v3402_v58 = vpop.permute.xlu0 %1271 }
 0x38f   :  { %4136 = vst [vmem:[#allocation107_spill] sm:$0xff] %v3402_v58 }
 0x390   :  { %v3404_v25 = vpop.permute.xlu1 %1273 }
 0x391   :  { %4137 = vst [vmem:[#allocation108_spill] sm:$0xff] %v3404_v25 }
 0x392   :  { %v824_v4 = vpop.permute.xlu0 %823 }
 0x393   :  { %v853_v8 = vsel %vm196_vm2, %v816_v54, %v824_v4  ;;  %v849_v31 = vsel %vm196_vm2, %v824_v4, %v832_v21 }
 0x394   :  { %v826_v10 = vpop.permute.xlu1 %825  ;;  %v868_v55 = vmul.f32 %v853_v8, %v4138_v36 }
 0x395   :  { %v854_v61 = vsel %vm196_vm2, %v818_v45, %v826_v10  ;;  %v850_v0 = vsel %vm196_vm2, %v826_v10, %v834_v28 }
 0x396   :  { %v872_v1 = vmul.f32 %v854_v61, %v4138_v36  ;;  %v840_v7 = vpop.permute.xlu0 %839  ;;  %v873_v30 = vmul.f32 %v850_v0, %v2288_v60 }
 0x397   :  { %v845_v58 = vsel %vm196_vm2, %v832_v21, %v840_v7  ;;  %v857_v25 = vsel %vm196_vm2, %v840_v7, %v816_v54 }
 0x398   :  { %v842_v43 = vpop.permute.xlu1 %841  ;;  %v880_v26 = vpack.c.bf16 %v872_v1, %v868_v55  ;;  %v867_v36 = vmul.f32 %v857_v25, %v2353_v5  ;;  %v870_v61 = vmul.f32 %v845_v58, %v2293_v63  ;;  %v869_v1 = vmul.f32 %v849_v31, %v2288_v60 }
 0x399   :  { %v846_v8 = vsel %vm196_vm2, %v834_v28, %v842_v43  ;;  %v858_v10 = vsel %vm196_vm2, %v842_v43, %v818_v45  ;;  %v4140_v45 = vpack.c.bf16 %v2963_v17, %v2957_v56  ;;  %v4141_v17 = vpack.c.bf16 %v2960_v24, %v2954_v11 }
 0x39a   :  { %v871_v62 = vmul.f32 %v858_v10, %v2353_v5  ;;  %v874_v54 = vmul.f32 %v846_v8, %v2293_v63  ;;  %1419 = vmatprep.subr.bf16.mxu0 %v880_v26  ;;  %v896_v21 = vpop.permute.xlu0 %895  ;;  %v881_v43 = vpack.c.bf16 %v873_v30, %v869_v1 }
 0x39b   :  { %v925_v0 = vsel %vm239_vm1, %v3338_v37, %v896_v21 }
 0x39c   :  { %v879_v55 = vpack.c.bf16 %v871_v62, %v867_v36  ;;  %v898_v28 = vpop.permute.xlu1 %897  ;;  %v882_v4 = vpack.c.bf16 %v874_v54, %v870_v61  ;;  %v940_v5 = vmul.f32 %v925_v0, %v2417_v6  ;;  %v4139_v62 = vpack.c.bf16 %v2925_v48, %v2933_v27 }
 0x39d   :  { %v926_v58 = vsel %vm239_vm1, %v3340_v2, %v898_v28  ;;  %v922_v63 = vsel %vm239_vm1, %v898_v28, %v3348_v57 }
 0x39e   :  { %v944_v60 = vmul.f32 %v926_v58, %v2417_v6  ;;  %1420 = vmatpush1.bf16.msra.mxu0 %v879_v55  ;;  %1501 = vmatprep.subr.bf16.mxu1 %v882_v4  ;;  %v912_v26 = vpop.permute.xlu0 %911  ;;  %v921_v6 = vsel %vm239_vm1, %v896_v21, %v3346_v44  ;;  %v945_v8 = vmul.f32 %v922_v63, %v2274_v53 }
 0x39f   :  { %v917_v31 = vsel %vm239_vm1, %v3346_v44, %v912_v26  ;;  %v929_v30 = vsel %vm239_vm1, %v912_v26, %v3338_v37  ;;  %1421 = vmatprep.subr.bf16.mxu0 %v4139_v62  ;;  %1502 = vmatpush1.bf16.msra.mxu1 %v881_v43  ;;  %v941_v61 = vmul.f32 %v921_v6, %v2274_v53 }
 0x3a0   :  { %v914_v25 = vpop.permute.xlu1 %913  ;;  %1503 = vmatprep.subr.bf16.mxu1 %v4140_v45  ;;  %v952_v7 = vpack.c.bf16 %v944_v60, %v940_v5  ;;  %v939_v27 = vmul.f32 %v929_v30, %v2413_v18  ;;  %v942_v44 = vmul.f32 %v917_v31, %v2268_v51  ;;  %v4143_v55 = vpack.c.bf16 %v2992_v40, %v2986_v46  ;;  %v4148_v45 = vld [vmem:[#allocation70_spill] sm:$0xff] }
 0x3a1   :  { %v918_v37 = vsel %vm239_vm1, %v3348_v57, %v914_v25  ;;  %v930_v48 = vsel %vm239_vm1, %v914_v25, %v3340_v2  ;;  %v4142_v2 = vpack.c.bf16 %v2928_v49, %v2922_v41  ;;  %v4144_v4 = vpack.c.bf16 %v3027_v14, %v3021_v12 }
 0x3a2   :  { %v943_v10 = vmul.f32 %v930_v48, %v2413_v18  ;;  %v946_v56 = vmul.f32 %v918_v37, %v2268_v51  ;;  %1422 = vmatpush1.bf16.msra.mxu0 %v4141_v17  ;;  %v968_v36 = vpop.permute.xlu0 %967  ;;  %v953_v51 = vpack.c.bf16 %v945_v8, %v941_v61  ;;  %v4145_v12 = vpack.c.bf16 %v3024_v52, %v3018_v42  ;;  %v4150_v37 = vld [vmem:[#allocation24_spill] sm:$0xff]  ;;  %v4154_v17 = vld [vmem:[#allocation69_spill] sm:$0xff] }
 0x3a3   :  { %v997_v57 = vsel %vm283_vm4, %v3357_v15, %v968_v36  ;;  %1423 = vmatprep.subr.bf16.mxu0 %v952_v7  ;;  %1504 = vmatpush1.bf16.msra.mxu1 %v4142_v2  ;;  %v4147_v6 = vpack.c.bf16 %v3056_v34, %v3050_v32  ;;  %v4149_v7 = vpack.c.bf16 %v3091_v29, %v4148_v45  ;;  %v4151_v32 = vld [vmem:[#allocation28_spill] sm:$0xff]  ;;  %v4157_v2 = vld [vmem:[#allocation67_spill] sm:$0xff] }
 0x3a4   :  { %v951_v54 = vpack.c.bf16 %v943_v10, %v939_v27  ;;  %v970_v18 = vpop.permute.xlu1 %969  ;;  %v954_v21 = vpack.c.bf16 %v946_v56, %v942_v44  ;;  %v1012_v24 = vmul.f32 %v997_v57, %v2376_v33  ;;  %v4152_v44 = vld [vmem:[#allocation23_spill] sm:$0xff]  ;;  %v4156_v57 = vld [vmem:[#allocation68_spill] sm:$0xff] }
 0x3a5   :  { %v998_v11 = vsel %vm283_vm4, %v3359_v19, %v970_v18  ;;  %v994_v53 = vsel %vm283_vm4, %v970_v18, %v3366_v16  ;;  %v4153_v56 = vld [vmem:[#allocation71_spill] sm:$0xff] }
 0x3a6   :  { %v1016_v1 = vmul.f32 %v998_v11, %v2376_v33  ;;  %1424 = vmatpush1.bf16.msra.mxu0 %v951_v54  ;;  %1505 = vmatprep.subr.bf16.mxu1 %v954_v21  ;;  %v984_v41 = vpop.permute.xlu0 %983  ;;  %v993_v33 = vsel %vm283_vm4, %v968_v36, %v3364_v13  ;;  %v1017_v58 = vmul.f32 %v994_v53, %v2332_v35  ;;  %v4159_v11 = vld [vmem:[#allocation47_spill] sm:$0xff] }
 0x3a7   :  { %v989_v49 = vsel %vm283_vm4, %v3364_v13, %v984_v41  ;;  %v1001_v0 = vsel %vm283_vm4, %v984_v41, %v3357_v15  ;;  %1425 = vmatprep.subr.bf16.mxu0 %v4143_v55  ;;  %1506 = vmatpush1.bf16.msra.mxu1 %v953_v51  ;;  %v1013_v60 = vmul.f32 %v993_v33, %v2332_v35  ;;  %v4161_v41 = vld [vmem:[#allocation49_spill] sm:$0xff]  ;;  %v4163_v33 = vld [vmem:[#allocation63_spill] sm:$0xff] }
 0x3a8   :  { %v986_v28 = vpop.permute.xlu1 %985  ;;  %1507 = vmatprep.subr.bf16.mxu1 %v4144_v4  ;;  %v1024_v43 = vpack.c.bf16 %v1016_v1, %v1012_v24  ;;  %v1011_v40 = vmul.f32 %v1001_v0, %v2382_v39  ;;  %v1014_v13 = vmul.f32 %v989_v49, %v2337_v38  ;;  %v4155_v36 = vpack.c.bf16 %v4153_v56, %v4154_v17  ;;  %v4160_v24 = vld [vmem:[#allocation48_spill] sm:$0xff]  ;;  %v4162_v49 = vld [vmem:[#allocation50_spill] sm:$0xff] }
 0x3a9   :  { %v990_v15 = vsel %vm283_vm4, %v3366_v16, %v986_v28  ;;  %v1002_v46 = vsel %vm283_vm4, %v986_v28, %v3359_v19  ;;  %v4146_v19 = vpack.c.bf16 %v2995_v22, %v2989_v9  ;;  %v1100_v53 = vpack.c.bf16 %v4160_v24, %v4159_v11  ;;  %v4164_v28 = vld [vmem:[#allocation64_spill] sm:$0xff]  ;;  %v4191_v24 = vld [vmem:[#allocation74_spill] sm:$0xff] }
 0x3aa   :  { %v1015_v5 = vmul.f32 %v1002_v46, %v2382_v39  ;;  %v1018_v14 = vmul.f32 %v990_v15, %v2337_v38  ;;  %1426 = vmatpush1.bf16.msra.mxu0 %v4145_v12  ;;  %v1040_v63 = vpop.permute.xlu0 %1039  ;;  %v1025_v38 = vpack.c.bf16 %v1017_v58, %v1013_v60  ;;  %v1102_v0 = vpack.c.bf16 %v4162_v49, %v4161_v41  ;;  %v4165_v58 = vld [vmem:[#allocation45_spill] sm:$0xff]  ;;  %v4166_v15 = vld [vmem:[#allocation43_spill] sm:$0xff]  ;;  %v4172_v60 = vld [vmem:[#allocation44_spill] sm:$0xff] }
 0x3ab   :  { %v1069_v16 = vsel %vm327_vm3, %v3368_v59, %v1040_v63  ;;  %1427 = vmatprep.subr.bf16.mxu0 %v1024_v43  ;;  %1508 = vmatpush1.bf16.msra.mxu1 %v4146_v19  ;;  %v1104_v4 = vpack.c.bf16 %v4164_v28, %v4163_v33  ;;  %v4167_v46 = vpack.c.bf16 %v4165_v58, %v4166_v15  ;;  %v4194_v41 = vld [vmem:[#allocation103_spill] sm:$0xff]  ;;  %v4196_v33 = vld [vmem:[#allocation76_spill] sm:$0xff] }
 0x3ac   :  { %v1023_v26 = vpack.c.bf16 %v1015_v5, %v1011_v40  ;;  %v1042_v39 = vpop.permute.xlu1 %1041  ;;  %v1026_v31 = vpack.c.bf16 %v1018_v14, %v1014_v13  ;;  %v1084_v42 = vmul.f32 %v1069_v16, %v2365_v23  ;;  %v4168_v40 = vld [vmem:[#allocation65_spill] sm:$0xff]  ;;  %v4169_v13 = vld [vmem:[#allocation66_spill] sm:$0xff]  ;;  %v4170_v14 = vld [vmem:[#allocation99_spill] sm:$0xff] }
 0x3ad   :  { %v1070_v52 = vsel %vm327_vm3, %v3373_v3, %v1042_v39  ;;  %v1066_v35 = vsel %vm327_vm3, %v1042_v39, %v3380_v20  ;;  %v1106_v5 = vpack.c.bf16 %v4169_v13, %v4168_v40  ;;  %v4175_v39 = vld [vmem:[#allocation52_spill] sm:$0xff]  ;;  %v4199_v13 = vld [vmem:[#allocation102_spill] sm:$0xff] }
 0x3ae   :  { %v1088_v30 = vmul.f32 %v1070_v52, %v2365_v23  ;;  %1428 = vmatpush1.bf16.msra.mxu0 %v1023_v26  ;;  %1509 = vmatprep.subr.bf16.mxu1 %v1026_v31  ;;  %v1056_v9 = vpop.permute.xlu0 %1055  ;;  %v1065_v23 = vsel %vm327_vm3, %v1040_v63, %v3378_v50  ;;  %v1089_v48 = vmul.f32 %v1066_v35, %v4150_v37  ;;  %v4171_v63 = vld [vmem:[#allocation46_spill] sm:$0xff]  ;;  %v4174_v26 = vld [vmem:[#allocation51_spill] sm:$0xff] }
 0x3af   :  { %v1061_v22 = vsel %vm327_vm3, %v3378_v50, %v1056_v9  ;;  %v1073_v62 = vsel %vm327_vm3, %v1056_v9, %v3368_v59  ;;  %1429 = vmatprep.subr.bf16.mxu0 %v4147_v6  ;;  %1510 = vmatpush1.bf16.msra.mxu1 %v1025_v38  ;;  %v4173_v16 = vpack.c.bf16 %v4171_v63, %v4172_v60  ;;  %v4176_v38 = vld [vmem:[#allocation100_spill] sm:$0xff]  ;;  %v4179_v9 = vld [vmem:[#allocation54_spill] sm:$0xff] }
 0x3b0   :  { %v1058_v25 = vpop.permute.xlu1 %1057  ;;  %1511 = vmatprep.subr.bf16.mxu1 %v4149_v7  ;;  %v1096_v8 = vpack.c.bf16 %v1088_v30, %v1084_v42  ;;  %v1083_v27 = vmul.f32 %v1073_v62, %v4151_v32  ;;  %v1086_v50 = vmul.f32 %v1061_v22, %v4152_v44  ;;  %v1103_v31 = vpack.c.bf16 %v4175_v39, %v4174_v26  ;;  %v4177_v42 = vld [vmem:[#allocation98_spill] sm:$0xff]  ;;  %v4178_v30 = vld [vmem:[#allocation53_spill] sm:$0xff]  ;;  %v4201_v63 = vld [vmem:[#allocation36_spill] sm:$0xff] }
 0x3b1   :  { %v1062_v59 = vsel %vm327_vm3, %v3380_v20, %v1058_v25  ;;  %v1074_v34 = vsel %vm327_vm3, %v1058_v25, %v3373_v3  ;;  %v1085_v20 = vmul.f32 %v1065_v23, %v4150_v37  ;;  %v4158_v3 = vpack.c.bf16 %v4156_v57, %v4157_v2  ;;  %v4180_v62 = vld [vmem:[#allocation97_spill] sm:$0xff]  ;;  %v4181_v23 = vld [vmem:[#allocation30_spill] sm:$0xff] }
 0x3b2   :  { %v1087_v10 = vmul.f32 %v1074_v34, %v4151_v32  ;;  %v1090_v29 = vmul.f32 %v1062_v59, %v4152_v44  ;;  %1430 = vmatpush1.bf16.msra.mxu0 %v4155_v36  ;;  %v3558_v61 = vpop.permute.xlu0 %1347  ;;  %v1105_v22 = vpack.c.bf16 %v4179_v9, %v4178_v30  ;;  %v4183_v59 = vld [vmem:[#allocation73_spill] sm:$0xff]  ;;  %v4189_v57 = vld [vmem:[#allocation26_spill] sm:$0xff]  ;;  %v4206_v9 = vld [vmem:[#allocation87_spill] sm:$0xff] }
 0x3b3   :  { %1431 = vmatprep.subr.bf16.mxu0 %v1096_v8  ;;  %1512 = vmatpush1.bf16.msra.mxu1 %v4158_v3  ;;  %v1097_v51 = vpack.c.bf16 %v1089_v48, %v1085_v20  ;;  %v4182_v48 = vld [vmem:[#allocation75_spill] sm:$0xff]  ;;  %v4185_v32 = vld [vmem:[#allocation29_spill] sm:$0xff] }
 0x3b4   :  { %v1095_v54 = vpack.c.bf16 %v1087_v10, %v1083_v27  ;;  %v3564_v18 = vpop.permute.xlu1 %1349  ;;  %v1098_v21 = vpack.c.bf16 %v1090_v29, %v1086_v50  ;;  %v4184_v34 = vpack.c.bf16 %v4182_v48, %v4183_v59  ;;  %v4186_v50 = vld [vmem:[#allocation79_spill] sm:$0xff]  ;;  %v4187_v10 = vld [vmem:[#allocation77_spill] sm:$0xff] }
 0x3b5   :  { %v4188_v29 = vpack.c.bf16 %v4186_v50, %v4187_v10  ;;  %v4190_v3 = vld [vmem:[#allocation27_spill] sm:$0xff] }
 0x3b6   :  { %1432 = vmatpush1.bf16.msra.mxu0 %v1095_v54  ;;  %1513 = vmatprep.subr.bf16.mxu1 %v1098_v21  ;;  %v1120_v1 = vpop.permute.xlu0 %1119  ;;  %v4214_v10 = vld [vmem:[#allocation107_spill] sm:$0xff] }
 0x3b7   :  { %1433 = vmatprep.subr.bf16.mxu0 %v1100_v53  ;;  %1514 = vmatpush1.bf16.msra.mxu1 %v1097_v51  ;;  %v1145_v12 = vsel %vm375_vm5, %v1120_v1, %v4170_v14  ;;  %v1149_v6 = vsel %vm375_vm5, %v4180_v62, %v1120_v1  ;;  %v4192_v53 = vld [vmem:[#allocation72_spill] sm:$0xff] }
 0x3b8   :  { %v3570_v55 = vpop.permute.xlu1 %1329  ;;  %1515 = vmatprep.subr.bf16.mxu1 %v1102_v0  ;;  %v1164_v25 = vmul.f32 %v1145_v12, %v4181_v23  ;;  %v1163_v17 = vmul.f32 %v1149_v6, %v4185_v32  ;;  %v4193_v1 = vpack.c.bf16 %v4191_v24, %v4192_v53  ;;  %v4195_v0 = vld [vmem:[#allocation78_spill] sm:$0xff] }
 0x3b9   :  { %v4197_v28 = vpack.c.bf16 %v4195_v0, %v4196_v33  ;;  %v4220_v24 = vld [vmem:[#allocation106_spill] sm:$0xff] }
 0x3ba   :  { %v1136_v43 = vpop.permute.xlu0 %1135  ;;  %1434 = vmatpush1.bf16.msra.mxu0 %v4167_v46  ;;  %v4198_v46 = vld [vmem:[#allocation104_spill] sm:$0xff] }
 0x3bb   :  { %1435 = vmatprep.subr.bf16.mxu0 %v1104_v4  ;;  %1516 = vmatpush1.bf16.msra.mxu1 %v4173_v16  ;;  %v1141_v8 = vsel %vm375_vm5, %v4170_v14, %v1136_v43  ;;  %v1153_v37 = vsel %vm375_vm5, %v1136_v43, %v4180_v62  ;;  %v4200_v14 = vld [vmem:[#allocation101_spill] sm:$0xff] }
 0x3bc   :  { %v1122_v19 = vpop.permute.xlu1 %1121  ;;  %1517 = vmatprep.subr.bf16.mxu1 %v1106_v5  ;;  %v1165_v2 = vmul.f32 %v1141_v8, %v4189_v57  ;;  %v1166_v54 = vmul.f32 %v1153_v37, %v4190_v3  ;;  %v4210_v37 = vld [vmem:[#allocation38_spill] sm:$0xff] }
 0x3bd   :  { %v1146_v52 = vsel %vm375_vm5, %v1122_v19, %v4176_v38  ;;  %v1150_v35 = vsel %vm375_vm5, %v4177_v42, %v1122_v19 }
 0x3be   :  { %v1168_v45 = vmul.f32 %v1146_v52, %v4181_v23  ;;  %v1192_v7 = vpop.permute.xlu0 %1191  ;;  %1436 = vmatpush1.bf16.msra.mxu0 %v1103_v31  ;;  %v1167_v27 = vmul.f32 %v1150_v35, %v4185_v32  ;;  %v4202_v31 = vld [vmem:[#allocation83_spill] sm:$0xff] }
 0x3bf   :  { %1437 = vmatprep.subr.bf16.mxu0 %v4184_v34  ;;  %1518 = vmatpush1.bf16.msra.mxu1 %v1105_v22  ;;  %v1217_v49 = vsel %vm419_vm7, %v1192_v7, %v4194_v41  ;;  %v1221_v12 = vsel %vm419_vm7, %v4200_v14, %v1192_v7  ;;  %v4207_v22 = vld [vmem:[#allocation85_spill] sm:$0xff] }
 0x3c0   :  { %v1138_v44 = vpop.permute.xlu1 %1137  ;;  %1519 = vmatprep.subr.bf16.mxu1 %v4188_v29  ;;  %v1176_v56 = vpack.c.bf16 %v1168_v45, %v1164_v25  ;;  %v1175_v4 = vpack.c.bf16 %v1167_v27, %v1163_v17  ;;  %v1236_v60 = vmul.f32 %v1217_v49, %v4201_v63  ;;  %v4208_v62 = vpack.c.bf16 %v4206_v9, %v4207_v22  ;;  %v4209_v7 = vld [vmem:[#allocation37_spill] sm:$0xff]  ;;  %v4211_v27 = vld [vmem:[#allocation82_spill] sm:$0xff]  ;;  %v4216_v17 = vld [vmem:[#allocation84_spill] sm:$0xff] }
 0x3c1   :  { %v1142_v36 = vsel %vm375_vm5, %v4176_v38, %v1138_v44  ;;  %v1154_v20 = vsel %vm375_vm5, %v1138_v44, %v4177_v42  ;;  %v4203_v38 = vld [vmem:[#allocation81_spill] sm:$0xff]  ;;  %v4205_v42 = vld [vmem:[#allocation35_spill] sm:$0xff]  ;;  %v4212_v44 = vld [vmem:[#allocation80_spill] sm:$0xff] }
 0x3c2   :  { %v1169_v21 = vmul.f32 %v1142_v36, %v4189_v57  ;;  %v1170_v51 = vmul.f32 %v1154_v20, %v4190_v3  ;;  %v1208_v11 = vpop.permute.xlu0 %1207  ;;  %1438 = vmatpush1.bf16.msra.mxu0 %v4193_v1  ;;  %v4204_v52 = vpack.c.bf16 %v4202_v31, %v4203_v38  ;;  %v1235_v23 = vmul.f32 %v1221_v12, %v4205_v42  ;;  %v4221_v1 = vld [vmem:[#allocation105_spill] sm:$0xff]  ;;  %v4222_v49 = vld [vmem:[#allocation32_spill] sm:$0xff]  ;;  %v4228_v12 = vld [vmem:[#allocation31_spill] sm:$0xff] }
 0x3c3   :  { %1439 = vmatprep.subr.bf16.mxu0 %v1176_v56  ;;  %1520 = vmatpush1.bf16.msra.mxu1 %v4197_v28  ;;  %v1213_v26 = vsel %vm419_vm7, %v4194_v41, %v1208_v11  ;;  %v1225_v39 = vsel %vm419_vm7, %v1208_v11, %v4200_v14  ;;  %v4213_v50 = vpack.c.bf16 %v4211_v27, %v4212_v44  ;;  %v4215_v56 = vld [vmem:[#allocation86_spill] sm:$0xff]  ;;  %v4232_v31 = vld [vmem:[#allocation41_spill] sm:$0xff] }
 0x3c4   :  { %v1177_v43 = vpack.c.bf16 %v1169_v21, %v1165_v2  ;;  %v1194_v58 = vpop.permute.xlu1 %1193  ;;  %v1178_v15 = vpack.c.bf16 %v1170_v51, %v1166_v54  ;;  %v1237_v8 = vmul.f32 %v1213_v26, %v4209_v7  ;;  %v1238_v48 = vmul.f32 %v1225_v39, %v4210_v37  ;;  %v4218_v54 = vld [vmem:[#allocation60_spill] sm:$0xff]  ;;  %v4234_v9 = vld [vmem:[#allocation34_spill] sm:$0xff] }
 0x3c5   :  { %v1218_v40 = vsel %vm419_vm7, %v1194_v58, %v4198_v46  ;;  %v1222_v5 = vsel %vm419_vm7, %v4199_v13, %v1194_v58  ;;  %v4217_v36 = vpack.c.bf16 %v4215_v56, %v4216_v17  ;;  %v1368_v21 = vsel %vm507_vm8, %v3564_v18, %v4218_v54  ;;  %v4219_v51 = vld [vmem:[#allocation108_spill] sm:$0xff] }
 0x3c6   :  { %v1240_v16 = vmul.f32 %v1218_v40, %v4201_v63  ;;  %1521 = vmatprep.subr.bf16.mxu1 %v1178_v15  ;;  %v1264_v19 = vpop.permute.xlu0 %1263  ;;  %1440 = vmatpush1.bf16.msra.mxu0 %v1175_v4  ;;  %v1239_v35 = vmul.f32 %v1222_v5, %v4205_v42  ;;  %v4223_v58 = vld [vmem:[#allocation56_spill] sm:$0xff]  ;;  %v4224_v15 = vld [vmem:[#allocation55_spill] sm:$0xff]  ;;  %v4227_v5 = vld [vmem:[#allocation62_spill] sm:$0xff]  ;;  %v1378_v38 = vmul.f32 %v1368_v21, %v4232_v31 }
 0x3c7   :  { %1441 = vmatprep.subr.bf16.mxu0 %v4204_v52  ;;  %1522 = vmatpush1.bf16.msra.mxu1 %v1177_v43  ;;  %v1289_v29 = vsel %vm463_vm6, %v1264_v19, %v4214_v10  ;;  %v1293_v41 = vsel %vm463_vm6, %v4221_v1, %v1264_v19  ;;  %v4226_v40 = vld [vmem:[#allocation59_spill] sm:$0xff]  ;;  %v1356_v14 = vsel %vm507_vm8, %v4227_v5, %v3564_v18  ;;  %v4230_v19 = vld [vmem:[#allocation89_spill] sm:$0xff]  ;;  %v4243_v17 = vld [vmem:[#allocation92_spill] sm:$0xff] }
 0x3c8   :  { %v1210_v30 = vpop.permute.xlu1 %1209  ;;  %1523 = vmatprep.subr.bf16.mxu1 %v4208_v62  ;;  %v1248_v6 = vpack.c.bf16 %v1240_v16, %v1236_v60  ;;  %v1247_v20 = vpack.c.bf16 %v1239_v35, %v1235_v23  ;;  %v1308_v0 = vmul.f32 %v1289_v29, %v4222_v49  ;;  %v4229_v16 = vld [vmem:[#allocation91_spill] sm:$0xff]  ;;  %v1307_v52 = vmul.f32 %v1293_v41, %v4228_v12  ;;  %v4233_v35 = vld [vmem:[#allocation33_spill] sm:$0xff]  ;;  %v4242_v29 = vld [vmem:[#allocation42_spill] sm:$0xff] }
 0x3c9   :  { %v1214_v25 = vsel %vm419_vm7, %v4198_v46, %v1210_v30  ;;  %v1226_v45 = vsel %vm419_vm7, %v1210_v30, %v4199_v13  ;;  %v4225_v46 = vpack.c.bf16 %v4223_v58, %v4224_v15  ;;  %v1367_v13 = vsel %vm507_vm8, %v3558_v61, %v4226_v40  ;;  %v4244_v54 = vld [vmem:[#allocation96_spill] sm:$0xff]  ;;  %v4245_v21 = vld [vmem:[#allocation94_spill] sm:$0xff]  ;;  %v4249_v15 = vld [vmem:[#allocation95_spill] sm:$0xff] }
 0x3ca   :  { %v1241_v59 = vmul.f32 %v1214_v25, %v4209_v7  ;;  %v1242_v34 = vmul.f32 %v1226_v45, %v4210_v37  ;;  %v1280_v32 = vpop.permute.xlu0 %1279  ;;  %1442 = vmatpush1.bf16.msra.mxu0 %v4213_v50  ;;  %v4231_v26 = vpack.c.bf16 %v4229_v16, %v4230_v19  ;;  %v4235_v25 = vld [vmem:[#allocation58_spill] sm:$0xff]  ;;  %v4236_v45 = vld [vmem:[#allocation57_spill] sm:$0xff]  ;;  %v1377_v56 = vmul.f32 %v1356_v14, %v4242_v29 }
 0x3cb   :  { %1443 = vmatprep.subr.bf16.mxu0 %v1248_v6  ;;  %1524 = vmatpush1.bf16.msra.mxu1 %v4217_v36  ;;  %v1285_v4 = vsel %vm463_vm6, %v4214_v10, %v1280_v32  ;;  %v1297_v43 = vsel %vm463_vm6, %v1280_v32, %v4221_v1  ;;  %v4237_v7 = vpack.c.bf16 %v4235_v25, %v4236_v45  ;;  %v4252_v14 = vmov 0   ;;  %v4255_v25 = vld [vmem:[#allocation17_spill] sm:$0xff] }
 0x3cc   :  { %v1249_v57 = vpack.c.bf16 %v1241_v59, %v1237_v8  ;;  %v1266_v2 = vpop.permute.xlu1 %1265  ;;  %v1250_v3 = vpack.c.bf16 %v1242_v34, %v1238_v48  ;;  %v1309_v30 = vmul.f32 %v1285_v4, %v4233_v35  ;;  %v1310_v22 = vmul.f32 %v1297_v43, %v4234_v9  ;;  %v4238_v8 = vld [vmem:[#allocation61_spill] sm:$0xff]  ;;  %v4239_v48 = vld [vmem:[#allocation90_spill] sm:$0xff]  ;;  %v4240_v59 = vld [vmem:[#allocation88_spill] sm:$0xff] }
 0x3cd   :  { %v1290_v11 = vsel %vm463_vm6, %v1266_v2, %v4219_v51  ;;  %v1294_v53 = vsel %vm463_vm6, %v4220_v24, %v1266_v2  ;;  %v1355_v37 = vsel %vm507_vm8, %v4238_v8, %v3558_v61  ;;  %v4241_v34 = vpack.c.bf16 %v4239_v48, %v4240_v59  ;;  %v4256_v59 = vld [vmem:[#allocation18_spill] sm:$0xff] }
 0x3ce   :  { %v1312_v33 = vmul.f32 %v1290_v11, %v4222_v49  ;;  %1525 = vmatprep.subr.bf16.mxu1 %v1250_v3  ;;  %v1328_v28 = vpop.permute.xlu0 %1327  ;;  %1444 = vmatpush1.bf16.msra.mxu0 %v1247_v20  ;;  %v1311_v63 = vmul.f32 %v1294_v53, %v4228_v12  ;;  %v1374_v32 = vmul.f32 %v1367_v13, %v4232_v31  ;;  %v4247_v53 = vld [vmem:[#allocation40_spill] sm:$0xff] }
 0x3cf   :  { %1445 = vmatprep.subr.bf16.mxu0 %v4225_v46  ;;  %1526 = vmatpush1.bf16.msra.mxu1 %v1249_v57  ;;  %v1799_v36 = vcombine.low %v4243_v17, %v4243_v17  ;;  %v1373_v2 = vmul.f32 %v1355_v37, %v4242_v29  ;;  %v4250_v46 = vld [vmem:[#allocation93_spill] sm:$0xff]  ;;  %v3784_v45 = vrot.slane %v106_v47, %v4255_v25 }
 0x3d0   :  { %v1282_v60 = vpop.permute.xlu1 %1281  ;;  %1527 = vmatprep.subr.bf16.mxu1 %v4231_v26  ;;  %v1320_v39 = vpack.c.bf16 %v1312_v33, %v1308_v0  ;;  %v1319_v27 = vpack.c.bf16 %v1311_v63, %v1307_v52  ;;  %v1390_v57 = vpack.c.bf16 %v1378_v38, %v1374_v32  ;;  %v4248_v0 = vld [vmem:[#allocation39_spill] sm:$0xff]  ;;  %v4251_v40 = vpack.c.bf16 %v4249_v15, %v4250_v46 }
 0x3d1   :  { %v1286_v42 = vsel %vm463_vm6, %v4219_v51, %v1282_v60  ;;  %v1298_v18 = vsel %vm463_vm6, %v1282_v60, %v4220_v24  ;;  %v4246_v51 = vpack.c.bf16 %v4244_v54, %v4245_v21  ;;  %v1389_v24 = vpack.c.bf16 %v1377_v56, %v1373_v2 }
 0x3d2   :  { %v1313_v62 = vmul.f32 %v1286_v42, %v4233_v35  ;;  %v1314_v6 = vmul.f32 %v1298_v18, %v4234_v9  ;;  %v1336_v23 = vpop.permute.xlu0 %1335  ;;  %1446 = vmatpush1.bf16.msra.mxu0 %v4237_v7  ;;  %v1839_v18 = vld [vmem:[%s3868_s8 + $0x8] ss:$0 sps:$4 sm:$0xff]  }
 0x3d3   :  { %1447 = vmatprep.subr.bf16.mxu0 %v1320_v39  ;;  %1528 = vmatpush1.bf16.msra.mxu1 %v4241_v34  ;;  %v1365_v20 = vsel %vm507_vm8, %v1328_v28, %v1336_v23  ;;  %v3787_v34 = vrot.slane %v106_v47, %v4256_v59 }
 0x3d4   :  { %v1321_v44 = vpack.c.bf16 %v1313_v62, %v1309_v30  ;;  %v1346_v50 = vpop.permute.xlu1 %1345  ;;  %v1322_v10 = vpack.c.bf16 %v1314_v6, %v1310_v22  ;;  %v1379_v1 = vmul.f32 %v1365_v20, %v4247_v53  ;;  %v4253_v30 = vld [vmem:[#allocation15_spill] sm:$0xff]  ;;  %v4254_v6 = vld [vmem:[#allocation16_spill] sm:$0xff]  ;;  %v1581_v20 = vld [vmem:[%s3870_s10] sm:$0xf] }
 0x3d5   :  { %v3778_v9 = vrot.slane %v106_v47, %v4253_v30  ;;  %v1590_v2 = vrot.slane %v1581_v20, %v4253_v30  ;;  %v1598_v21 = vrot.slane %v1581_v20, %v4255_v25 }
 0x3d6   :  { %1529 = vmatprep.subr.bf16.mxu1 %v1322_v10  ;;  %v1344_v61 = vpop.permute.xlu0 %1343  ;;  %1448 = vmatpush1.bf16.msra.mxu0 %v1319_v27 }
 0x3d7   :  { %v1361_v3 = vsel %vm507_vm8, %v1336_v23, %v1344_v61  ;;  %1458 = vmatprep.subr.bf16.mxu0 %v4246_v51  ;;  %1530 = vmatpush1.bf16.msra.mxu1 %v1321_v44  ;;  %v3781_v23 = vrot.slane %v106_v47, %v4254_v6  ;;  %v4258_v47 = vld [vmem:[#allocation20_spill] sm:$0xff] }
 0x3d8   :  { %v1338_v11 = vpop.permute.xlu1 %1337  ;;  %1540 = vmatprep.subr.bf16.mxu1 %v1390_v57  ;;  %v1380_v33 = vmul.f32 %v1361_v3, %v4248_v0  ;;  %v1611_v57 = vld [vmem:[%s3871_s11] sm:$0xf]  ;;  %v1594_v3 = vrot.slane %v1581_v20, %v4254_v6 }
 0x3d9   :  { %v1362_v41 = vsel %vm507_vm8, %v1338_v11, %v1346_v50  ;;  %v1366_v49 = vsel %vm507_vm8, %v3570_v55, %v1338_v11  ;;  %1450 = vmatmul.mubr.bf16.vlgmr.msra.gmra.mrb[8].mxu0 %v1799_v36  ;;  %v1616_v54 = vrot.slane %v1611_v57, %v4253_v30  ;;  %v1620_v11 = vrot.slane %v1611_v57, %v4254_v6  ;;  %v4260_v6 = vld [vmem:[#allocation22_spill] sm:$0xff] }
 0x3da   :  { %v1383_v4 = vmul.f32 %v1366_v49, %v4247_v53  ;;  %v1384_v43 = vmul.f32 %v1362_v41, %v4248_v0  ;;  %1532 = vmatmul.mubr.bf16.vlgmr.msra.gmra.mrb[8].mxu1 %v1799_v36  ;;  %v1352_v58 = vpop.permute.xlu0 %1351  ;;  %1459 = vmatpush1.bf16.msra.mxu0 %v4251_v40  ;;  %v1624_v41 = vrot.slane %v1611_v57, %v4255_v25 }
 0x3db   :  { %v1357_v13 = vsel %vm507_vm8, %v1344_v61, %v1352_v58  ;;  %v1369_v5 = vsel %vm507_vm8, %v1352_v58, %v1328_v28  ;;  %1541 = vmatpush1.bf16.msra.mxu1 %v1389_v24  ;;  %1490 = vmatprep.mubr.bf16.mxu0 %v4252_v14  ;;  %v1602_v24 = vrot.slane %v1581_v20, %v4256_v59 }
 0x3dc   :  { %v1391_v12 = vpack.c.bf16 %v1383_v4, %v1379_v1  ;;  %v1354_v63 = vpop.permute.xlu1 %1353  ;;  %v1392_v60 = vpack.c.bf16 %v1384_v43, %v1380_v33  ;;  %1572 = vmatprep.mubr.bf16.mxu1 %v4252_v14  ;;  %v1381_v26 = vmul.f32 %v1357_v13, %v4242_v29  ;;  %v1382_v39 = vmul.f32 %v1369_v5, %v4232_v31 }
 0x3dd   :  { %v1358_v16 = vsel %vm507_vm8, %v1346_v50, %v1354_v63  ;;  %v1370_v19 = vsel %vm507_vm8, %v1354_v63, %v3570_v55  ;;  %v1628_v33 = vrot.slane %v1611_v57, %v4256_v59 }
 0x3de   :  { %v1385_v28 = vmul.f32 %v1358_v16, %v4242_v29  ;;  %v1386_v38 = vmul.f32 %v1370_v19, %v4232_v31  ;;  %1460 = vmatprep.subr.bf16.mxu0 %v1392_v60 }
 0x3df   :  { %1461 = vmatpush1.bf16.msra.mxu0 %v1391_v12 }
 0x3e0   :  { %v1393_v52 = vpack.c.bf16 %v1385_v28, %v1381_v26  ;;  %v1394_v42 = vpack.c.bf16 %v1386_v38, %v1382_v39 }
 0x3e2   :  { %1542 = vmatprep.subr.bf16.mxu1 %v1394_v42  ;;  %v4257_v42 = vld [vmem:[#allocation19_spill] sm:$0xff] }
 0x3e3   :  { %1543 = vmatpush1.bf16.msra.mxu1 %v1393_v52 }
 0x3e5   :  { %1802 = vmatmul.mubr.msk.bf16.vlgmr.msra.gmra.mrb[8].mxu0 %vm1413_vm10, %v1839_v18 }
 0x3e6   :  { %1803 = vmatmul.mubr.msk.bf16.vlgmr.msra.gmra.mrb[8].mxu1 %vm1413_vm10, %v1839_v18 }
 0x3eb   :  { %v1401_v55 = vpop.permute.xlu0 %1400 }
 0x3ed   :  { %v1694_v60 = vpop.permute.xlu1 %1693 }
 0x3ee   :  { %v1696_v16 = vmul.f32 %v1694_v60, %v3778_v9  ;;  %v1697_v19 = vmul.f32 %v1694_v60, %v3781_v23  ;;  %v1698_v26 = vmul.f32 %v1694_v60, %v3784_v45  ;;  %v1699_v39 = vmul.f32 %v1694_v60, %v3787_v34 }
 0x3ef   :  { %v1708_v52 = vpop.permute.xlu0 %1707 }
 0x3f0   :  { %v1700_v18 = vadd.f32 %v1696_v16, %v4257_v42  ;;  %v1703_v25 = vadd.f32 %v1699_v39, %v4260_v6  ;;  %v1713_v20 = vmul.f32 %v1708_v52, %v3787_v34 }
 0x3f1   :  { %v1738_v28 = vpop.permute.xlu1 %1737 }
 0x3f2   :  { %v1741_v59 = vmul.f32 %v1738_v28, %v3781_v23  ;;  %v1743_v57 = vmul.f32 %v1738_v28, %v3787_v34 }
 0x4b8   :  { %v1492_v35 = vpop.f32.mrb[8].mxu0 }
 0x4b9   :  { %v1804_v31 = vadd.f32 %v1492_v35, %v1401_v55  ;;  %v1494_v22 = vpop.f32.mrb[9].mxu0  ;;  %v1574_v62 = vpop.f32.mrb[8].mxu1 }
 0x4ba   :  { %v1805_v7 = vadd.f32 %v1494_v22, %v1401_v55  ;;  %v1806_v8 = vadd.f32 %v1574_v62, %v1401_v55  ;;  %v1496_v37 = vpop.f32.mrb[10].mxu0  ;;  %v1576_v48 = vpop.f32.mrb[9].mxu1  ;;  %v4259_v22 = vld [vmem:[#allocation21_spill] sm:$0xff] }
 0x4bb   :  { %1840 = vtanh.f32 %v1804_v31  ;;  %v3790_v32 = vmul.f32 %v1804_v31, %v3778_v9  ;;  %v1807_v27 = vadd.f32 %v1576_v48, %v1401_v55  ;;  %v1497_v44 = vpop.f32.mrb[11].mxu0  ;;  %v1578_v50 = vpop.f32.mrb[10].mxu1  ;;  %v1701_v55 = vadd.f32 %v1697_v19, %v4258_v47 }
 0x4bc   :  { %1842 = vtanh.f32 %v1805_v7  ;;  %v3793_v10 = vmul.f32 %v1805_v7, %v3781_v23  ;;  %v3796_v29 = vmul.f32 %v1806_v8, %v3784_v45  ;;  %v1579_v56 = vpop.f32.mrb[11].mxu1  ;;  %v1702_v62 = vadd.f32 %v1698_v26, %v4259_v22 }
 0x4bd   :  { %1844 = vtanh.f32 %v1806_v8  ;;  %v3799_v17 = vmul.f32 %v1807_v27, %v3787_v34  ;;  %v1740_v7 = vmul.f32 %v1738_v28, %v3778_v9  ;;  %v1710_v37 = vmul.f32 %v1708_v52, %v3778_v9 }
 0x4be   :  { %v1684_v36 = vcombine.low %v3790_v32, %v3793_v10  ;;  %1846 = vtanh.f32 %v1807_v27  ;;  %v1711_v48 = vmul.f32 %v1708_v52, %v3781_v23  ;;  %v1856_v32 = vld [vmem:[%s3860_s0] sm:$0xff]  ;;  %v1718_v50 = vcombine.low %v1700_v18, %v1701_v55  ;;  %v1857_v23 = vld [vmem:[%s3860_s0 + $0x8] sm:$0xff]  ;;  %s1992_s0 = smov [#allocation10]  }
 0x4bf   :  { %v1685_v61 = vcombine.low %v3796_v29, %v3799_v17  ;;  %v1742_v10 = vmul.f32 %v1738_v28, %v3784_v45  ;;  %v1712_v56 = vmul.f32 %v1708_v52, %v3784_v45  ;;  %v1751_v34 = vrot.slane %v1743_v57, 4  ;;  %s1780_s28 = sshll.u32 %s1992_s0, 4  ;;  %s1781_s28 = int_to_ptr.vmem [resolvable:$true] %s1780_s28 }
 0x4c0   :  { %s1946_s29 = scalar_lea.vmem %s1781_s28, 512  ;;  %p1951_p5 = scmp.lt.s32.totalorder %s1781_s28, %s1781_s28 }
 0x4c1   :  { %v1750_v45 = vrot.slane %v1742_v10, 4  ;;  %p1947_p4 = scmp.ne.s32.totalorder %s1781_s28, %s1946_s29  ;;  %p1952_p6 = scmp.lt.s32.totalorder %s1946_s29, %s1946_s29 }
 0x4c3   :  { %p1953_p7 = por %p1952_p6, %p1951_p5 }
 0x4c5   :  { %v1841_v51 = vpop.eup %1840  ;;  %p1954_p8 = pnand %p1953_p7, %p1947_p4 }
 0x4c6   :  { %v1843_v53 = vpop.eup %1842  ;;  %v1607_v1 = vmul.f32 %v1841_v51, %v1590_v2  ;;  %v1728_v51 = vcombine.low %v1710_v37, %v1711_v48 }
 0x4c7   :  { %v1845_v49 = vpop.eup %1844  ;;  %v1608_v0 = vmul.f32 %v1843_v53, %v1594_v3  ;;  %v1719_v3 = vcombine.low %v1702_v62, %v1703_v25  ;;  %v1729_v53 = vcombine.low %v1712_v56, %v1713_v20 }
 0x4c8   :  { %v1847_v4 = vpop.eup %1846  ;;  %v1633_v43 = vadd.f32 %v1616_v54, %v1607_v1  ;;  %v1609_v58 = vmul.f32 %v1845_v49, %v1598_v21  ;;  %v1748_v54 = vrot.slane %v1740_v7, 4  ;;  %v1749_v21 = vrot.slane %v1741_v59, 4 }
 0x4c9   :  { %v1634_v15 = vadd.f32 %v1620_v11, %v1608_v0  ;;  %v1610_v46 = vmul.f32 %v1847_v4, %v1602_v24 }
 0x4ca   :  { %v1637_v40 = vmul.f32 1.442695, %v1633_v43  ;;  %v1635_v13 = vadd.f32 %v1624_v41, %v1609_v58 }
 0x4cb   :  { %v1639_v5 = vmul.f32 1.442695, %v1634_v15  ;;  %v1636_v14 = vadd.f32 %v1628_v33, %v1610_v46  ;;  %v1757_v49 = vsub.f32 %v1634_v15, %v1749_v21 }
 0x4cc   :  { %1848 = vpow2.f32 %v1637_v40  ;;  %v1641_v12 = vmul.f32 1.442695, %v1635_v13  ;;  %v1758_v33 = vsub.f32 %v1635_v13, %v1750_v45 }
 0x4cd   :  { %1850 = vpow2.f32 %v1639_v5  ;;  %v1643_v63 = vmul.f32 1.442695, %v1636_v14  ;;  %v1759_v46 = vsub.f32 %v1636_v14, %v1751_v34 }
 0x4ce   :  { %1852 = vpow2.f32 %v1641_v12 }
 0x4cf   :  { %1854 = vpow2.f32 %v1643_v63 }
 0x4d6   :  { %v1849_v38 = vpop.eup %1848 }
 0x4d7   :  { %v1851_v35 = vpop.eup %1850 }
 0x4d8   :  { %v1853_v30 = vpop.eup %1852  ;;  %v1649_v31 = vcombine.high %v1849_v38, %v1851_v35 }
 0x4d9   :  { %v1855_v8 = vpop.eup %1854 }
 0x4da   :  { %v1653_v27 = vmul.f32 %v1856_v32, %v1649_v31  ;;  %v1650_v44 = vcombine.high %v1853_v30, %v1855_v8 }
 0x4dc   :  { %v1688_v9 = vadd.f32 %v1684_v36, %v1653_v27  ;;  %v1654_v2 = vmul.f32 %v1857_v23, %v1650_v44  ;;  %v1756_v36 = vsub.f32 %v1633_v43, %v1748_v54 }
 0x4de   :  { %v1689_v11 = vadd.f32 %v1685_v61, %v1654_v2  ;;  %v1722_v24 = vmul.f32 %v1718_v50, %v1688_v9 }
 0x4e0   :  { %v1723_v1 = vmul.f32 %v1719_v3, %v1689_v11  ;;  %v1732_v41 = vadd.f32 %v1728_v51, %v1722_v24 }
 0x4e2   :  { %v1733_v0 = vadd.f32 %v1729_v53, %v1723_v1  ;;  %v1762_v4 = vcombine.high %v1732_v41, %v1732_v41  ;;  %v1766_v58 = vsel %vm181_vm0, %v1732_v41, %v1756_v36 }
 0x4e3   :  { %1770 = vst [vmem:[#allocation10] sm:$0xff] %v1766_v58 }
 0x4e4   :  { %v1763_v40 = vcombine.high %v1733_v0, %v1733_v0  ;;  %v1767_v29 = vsel %vm181_vm0, %v1762_v4, %v1757_v49  ;;  %v1768_v17 = vsel %vm181_vm0, %v1733_v0, %v1758_v33 }
 0x4e5   :  { %1771 = vst [vmem:[#allocation10 + $0x8] sm:$0xff] %v1767_v29  ;;  %1772 = vst [vmem:[#allocation10 + $0x10] sm:$0xff] %v1768_v17 }
 0x4e6   :  { %v1769_v61 = vsel %vm181_vm0, %v1763_v40, %v1759_v46 }
 0x4e7   :  { %1773 = vst [vmem:[#allocation10 + $0x18] sm:$0xff] %v1769_v61 }
 0x4e8   :  { %1957 = shalt.err (!%p1954_p8)
}
 0x4e9   :  { %s1958_s20 = scalar_lea.hbm %s3875_s15, 512 }
 0x4ea   :  { %p1959_p9 = scmp.ne.s32.totalorder %s3875_s15, %s1958_s20  ;;  %p1962_p10 = scmp.lt.u32.totalorder %s1958_s20, %s3875_s15 }
 0x4ec   :  { %p1964_p11 = pnand %p1962_p10, %p1959_p9 }
 0x4ee   :  { %1967 = shalt.err (!%p1964_p11)
}
 0x4ef   :  { %1783 = dma.vmem_to_hbm [thread:$0]  %s1781_s28, 512, %s3875_s15, [#allocation4]  }
 0x4f0   :  { %1974 = dma.done.wait [#allocation4], 512  }
 0x4f1   :  { %1975 = vsyncadd [#allocation4], 4294966784 }
 0x4f2   :  { %1787 = vsyncpa [#allocation3], 1 }
 0x4f3   :  { %1788 = vsyncpa [#allocation6], 1 }
 0x4f4   :  { %1789 = vsyncpa [#allocation9], 1 }
 0x4f5   :  { %1790 = vsyncpa [#allocation4], 1 }

</bundles_post_ra>
